<compile_context>
chip_gen: v7x
topology: tpu7x:2x2x1
jax: 0.10.0
libtpu: 0.0.40
codegen_flags: <defaults>
</compile_context>

<pallas_src>
import jax
import jax.numpy as jnp
from jax.experimental import pallas as pl
from jax.experimental.pallas import tpu as pltpu

IN_DIM = 80 * 80          # 6400
HIDDEN = 256
OUT_DIM = 1
TK = 3200                 # reduction tile: divisor of 6400, multiple of 128


def policy_kernel(x_ref, w1_ref, b1_ref, w2_ref, b2_ref, o_ref, h_acc):
    k = pl.program_id(0)

    @pl.when(k == 0)
    def _():
        h_acc[...] = jnp.zeros_like(h_acc)

    # Partial contraction of the first Linear over this K-tile.
    # bf16 x / W1 on the MXU, f32 accumulation.
    h_acc[...] += jnp.dot(x_ref[...], w1_ref[...],
                          preferred_element_type=jnp.float32)

    @pl.when(k == pl.num_programs(0) - 1)
    def _():
        h = jnp.maximum(h_acc[...] + b1_ref[...], 0.0)          # bias + ReLU
        # Second Linear has N=1: VPU multiply + row-reduce (w2_ref is a
        # (1, HIDDEN) row broadcast over the batch) instead of an MXU op.
        y = jnp.sum(h * w2_ref[...], axis=-1, keepdims=True) + b2_ref[...]
        # Numerically stable sigmoid: exp on EUP, then reciprocal.
        o_ref[...] = pl.reciprocal(1.0 + jnp.exp(-y))


def policy_forward(x_bf16, w1_bf16, b1, w2_row, b2):
    """x_bf16: (B, 6400) bf16, w1_bf16: (6400, 256) bf16,
    b1: (1, 256) f32, w2_row: (1, 256) f32, b2: (1, 1) f32."""
    B = x_bf16.shape[0]
    n_k = IN_DIM // TK
    return pl.pallas_call(
        policy_kernel,
        out_shape=jax.ShapeDtypeStruct((B, OUT_DIM), jnp.float32),
        grid_spec=pltpu.PrefetchScalarGridSpec(
            num_scalar_prefetch=0,
            grid=(n_k,),
            in_specs=[
                pl.BlockSpec((B, TK), lambda k: (0, k)),            # x tile (bf16)
                pl.BlockSpec((TK, HIDDEN), lambda k: (k, 0)),       # W1 tile (bf16)
                pl.BlockSpec((1, HIDDEN), lambda k: (0, 0)),        # b1 (full)
                pl.BlockSpec((1, HIDDEN), lambda k: (0, 0)),        # w2 row (full)
                pl.BlockSpec((1, OUT_DIM), lambda k: (0, 0)),       # b2 (full)
            ],
            out_specs=pl.BlockSpec((B, OUT_DIM), lambda k: (0, 0)),
            scratch_shapes=[pltpu.VMEM((B, HIDDEN), jnp.float32)],
        ),
        compiler_params=pltpu.CompilerParams(
            dimension_semantics=("arbitrary",)),
    )(x_bf16, w1_bf16, b1, w2_row, b2)


def init_params(key):
    """Deterministic synthetic params. Weights ~ xavier_normal (as in __init__),
    biases ~ U(-1/sqrt(fan_in), 1/sqrt(fan_in)) like PyTorch's Linear default."""
    k1, k2, k3, k4 = jax.random.split(key, 4)
    std1 = (2.0 / (IN_DIM + HIDDEN)) ** 0.5
    std2 = (2.0 / (HIDDEN + OUT_DIM)) ** 0.5
    # Stored already transposed relative to torch's (out, in) layout.
    w1 = std1 * jax.random.normal(k1, (IN_DIM, HIDDEN), jnp.float32)
    w2 = std2 * jax.random.normal(k2, (HIDDEN, OUT_DIM), jnp.float32)
    b1 = jax.random.uniform(k3, (1, HIDDEN), jnp.float32,
                            -1.0 / IN_DIM ** 0.5, 1.0 / IN_DIM ** 0.5)
    b2 = jax.random.uniform(k4, (1, OUT_DIM), jnp.float32,
                            -1.0 / HIDDEN ** 0.5, 1.0 / HIDDEN ** 0.5)
    return w1, b1, w2, b2


def reference_forward(x, w1, b1, w2, b2):
    h = jnp.maximum(x @ w1 + b1, 0.0)
    return jax.nn.sigmoid(h @ w2 + b2)


if __name__ == "__main__":
    key = jax.random.PRNGKey(0)
    k_x, k_p = jax.random.split(key)

    B = 8  # small batch of flattened 80x80 Pong frames
    x_f32 = jax.random.normal(k_x, (B, IN_DIM), jnp.float32)
    w1_f32, b1, w2_f32, b2 = init_params(k_p)

    # bf16 storage for the bandwidth-bound operands; accumulation stays f32.
    x_bf16 = x_f32.astype(jnp.bfloat16)
    w1_bf16 = w1_f32.astype(jnp.bfloat16)
    w2_row = w2_f32.T  # (1, HIDDEN) row for the in-kernel VPU reduce

    out = policy_forward(x_bf16, w1_bf16, b1, w2_row, b2)
    out = jax.block_until_ready(out)

    # Reference uses the same bf16-rounded inputs (cast back to f32) so the
    # only remaining differences are accumulation order / rounding.
    ref = reference_forward(x_bf16.astype(jnp.float32),
                            w1_bf16.astype(jnp.float32), b1, w2_f32, b2)
    assert out.shape == (B, OUT_DIM)
    assert jnp.allclose(out, ref, atol=2e-3, rtol=2e-3), "mismatch vs reference"

    print("KERNEL_OK")
</pallas_src>

<mosaic_0001>
module attributes {stable_mosaic.version = 11 : i64} {
  func.func @policy_kernel(%arg0: i32, %arg1: memref<8x3200xbf16, #tpu.memory_space<vmem>>, %arg2: memref<3200x256xbf16, #tpu.memory_space<vmem>>, %arg3: memref<1x256xf32, #tpu.memory_space<vmem>>, %arg4: memref<1x256xf32, #tpu.memory_space<vmem>>, %arg5: memref<1x1xf32, #tpu.memory_space<vmem>>, %arg6: memref<8x1xf32, #tpu.memory_space<vmem>>, %arg7: memref<8x256xf32, #tpu.memory_space<vmem>>) attributes {dimension_semantics = [#tpu.dimension_semantics<arbitrary>], iteration_bounds = array<i64: 2>, scalar_prefetch = 0 : i64, scratch_operands = 1 : i64, tpu.core_type = #tpu.core_type<tc>, window_params = [{transform_indices = @transform_0, window_bounds = array<i64: 8, 3200>}, {transform_indices = @transform_1, window_bounds = array<i64: 3200, 256>}, {pipeline_mode = #tpu.pipeline_mode<synchronous>, transform_indices = @transform_2, window_bounds = array<i64: 1, 256>}, {pipeline_mode = #tpu.pipeline_mode<synchronous>, transform_indices = @transform_3, window_bounds = array<i64: 1, 256>}, {pipeline_mode = #tpu.pipeline_mode<synchronous>, transform_indices = @transform_4, window_bounds = array<i64: 1, 1>}, {pipeline_mode = #tpu.pipeline_mode<synchronous>, transform_indices = @transform_5, window_bounds = array<i64: 8, 1>}]} {
    %c0_i32 = arith.constant 0 : i32
    %0 = arith.cmpi eq, %arg0, %c0_i32 : i32
    %1 = arith.extui %0 : i1 to i32
    %c0_i32_0 = arith.constant 0 : i32
    %2 = arith.cmpi ne, %1, %c0_i32_0 : i32
    scf.if %2 {
      %cst_9 = arith.constant 0.000000e+00 : f32
      %12 = vector.broadcast %cst_9 : f32 to vector<8x256xf32>
      %c0_10 = arith.constant 0 : index
      %c0_11 = arith.constant 0 : index
      %13 = vector.load %arg7[%c0_10, %c0_11] : memref<8x256xf32, #tpu.memory_space<vmem>>, vector<8x256xf32>
      tpu.vector_store %arg7[%c0_10, %c0_11], %12 {strides = array<i32>} : memref<8x256xf32, #tpu.memory_space<vmem>>, vector<8x256xf32>,
    } else {
    }
    %c0 = arith.constant 0 : index
    %c0_1 = arith.constant 0 : index
    %3 = vector.load %arg7[%c0, %c0_1] : memref<8x256xf32, #tpu.memory_space<vmem>>, vector<8x256xf32>
    %c0_2 = arith.constant 0 : index
    %c0_3 = arith.constant 0 : index
    %4 = vector.load %arg1[%c0_2, %c0_3] : memref<8x3200xbf16, #tpu.memory_space<vmem>>, vector<8x3200xbf16>
    %c0_4 = arith.constant 0 : index
    %c0_5 = arith.constant 0 : index
    %5 = vector.load %arg2[%c0_4, %c0_5] : memref<3200x256xbf16, #tpu.memory_space<vmem>>, vector<3200x256xbf16>
    %cst = arith.constant dense<0.000000e+00> : vector<8x256xf32>
    %6 = tpu.matmul %4, %5, %cst {dimension_numbers = #tpu.dot_dimension_numbers<[1], [0], [0], [1], [0, 0, 1, 1], [], []>} : vector<8x3200xbf16>, vector<3200x256xbf16>, vector<8x256xf32> -> vector<8x256xf32>
    %7 = arith.addf %3, %6 : vector<8x256xf32>
    %c0_6 = arith.constant 0 : index
    %c0_7 = arith.constant 0 : index
    %8 = vector.load %arg7[%c0_6, %c0_7] : memref<8x256xf32, #tpu.memory_space<vmem>>, vector<8x256xf32>
    tpu.vector_store %arg7[%c0_6, %c0_7], %7 {strides = array<i32>} : memref<8x256xf32, #tpu.memory_space<vmem>>, vector<8x256xf32>,
    %c1_i32 = arith.constant 1 : i32
    %9 = arith.cmpi eq, %arg0, %c1_i32 : i32
    %10 = arith.extui %9 : i1 to i32
    %c0_i32_8 = arith.constant 0 : i32
    %11 = arith.cmpi ne, %10, %c0_i32_8 : i32
    scf.if %11 {
      %c0_9 = arith.constant 0 : index
      %c0_10 = arith.constant 0 : index
      %12 = vector.load %arg7[%c0_9, %c0_10] : memref<8x256xf32, #tpu.memory_space<vmem>>, vector<8x256xf32>
      %c0_11 = arith.constant 0 : index
      %c0_12 = arith.constant 0 : index
      %13 = vector.load %arg3[%c0_11, %c0_12] : memref<1x256xf32, #tpu.memory_space<vmem>>, vector<1x256xf32>
      %14 = vector.broadcast %13 : vector<1x256xf32> to vector<8x256xf32>
      %15 = arith.addf %12, %14 : vector<8x256xf32>
      %cst_13 = arith.constant 0.000000e+00 : f32
      %16 = vector.broadcast %cst_13 : f32 to vector<8x256xf32>
      %17 = arith.maximumf %15, %16 : vector<8x256xf32>
      %c0_14 = arith.constant 0 : index
      %c0_15 = arith.constant 0 : index
      %18 = vector.load %arg4[%c0_14, %c0_15] : memref<1x256xf32, #tpu.memory_space<vmem>>, vector<1x256xf32>
      %19 = vector.broadcast %18 : vector<1x256xf32> to vector<8x256xf32>
      %20 = arith.mulf %17, %19 : vector<8x256xf32>
      %cst_16 = arith.constant dense<0.000000e+00> : vector<8xf32>
      %21 = vector.multi_reduction <add>, %20, %cst_16 [1] : vector<8x256xf32> to vector<8xf32>
      %22 = vector.shape_cast %21 : vector<8xf32> to vector<8x1xf32>
      %c0_17 = arith.constant 0 : index
      %c0_18 = arith.constant 0 : index
      %23 = vector.load %arg5[%c0_17, %c0_18] : memref<1x1xf32, #tpu.memory_space<vmem>>, vector<1x1xf32>
      %24 = vector.broadcast %23 : vector<1x1xf32> to vector<8x1xf32>
      %25 = arith.addf %22, %24 : vector<8x1xf32>
      %cst_19 = arith.constant 0.000000e+00 : f32
      %26 = vector.broadcast %cst_19 : f32 to vector<8x1xf32>
      %27 = arith.subf %26, %25 : vector<8x1xf32>
      %28 = math.exp %27 : vector<8x1xf32>
      %cst_20 = arith.constant 1.000000e+00 : f32
      %29 = vector.broadcast %cst_20 : f32 to vector<8x1xf32>
      %30 = arith.addf %29, %28 : vector<8x1xf32>
      %31 = tpu.reciprocal %30 : vector<8x1xf32> -> vector<8x1xf32>
      %c0_21 = arith.constant 0 : index
      %c0_22 = arith.constant 0 : index
      %32 = vector.load %arg6[%c0_21, %c0_22] : memref<8x1xf32, #tpu.memory_space<vmem>>, vector<8x1xf32>
      tpu.vector_store %arg6[%c0_21, %c0_22], %31 {strides = array<i32>} : memref<8x1xf32, #tpu.memory_space<vmem>>, vector<8x1xf32>,
    } else {
    }
    return
  }
  func.func @transform_0(%arg0: i32) -> (i32, i32) {
    %c0_i32 = arith.constant 0 : i32
    %c0_i32_0 = arith.constant 0 : i32
    return %c0_i32, %arg0 : i32, i32
  }
  func.func @transform_1(%arg0: i32) -> (i32, i32) {
    %c0_i32 = arith.constant 0 : i32
    %c0_i32_0 = arith.constant 0 : i32
    return %arg0, %c0_i32 : i32, i32
  }
  func.func @transform_2(%arg0: i32) -> (i32, i32) {
    %c0_i32 = arith.constant 0 : i32
    %c0_i32_0 = arith.constant 0 : i32
    %c0_i32_1 = arith.constant 0 : i32
    return %c0_i32, %c0_i32_0 : i32, i32
  }
  func.func @transform_3(%arg0: i32) -> (i32, i32) {
    %c0_i32 = arith.constant 0 : i32
    %c0_i32_0 = arith.constant 0 : i32
    %c0_i32_1 = arith.constant 0 : i32
    return %c0_i32, %c0_i32_0 : i32, i32
  }
  func.func @transform_4(%arg0: i32) -> (i32, i32) {
    %c0_i32 = arith.constant 0 : i32
    %c0_i32_0 = arith.constant 0 : i32
    %c0_i32_1 = arith.constant 0 : i32
    return %c0_i32, %c0_i32_0 : i32, i32
  }
  func.func @transform_5(%arg0: i32) -> (i32, i32) {
    %c0_i32 = arith.constant 0 : i32
    %c0_i32_0 = arith.constant 0 : i32
    %c0_i32_1 = arith.constant 0 : i32
    return %c0_i32, %c0_i32_0 : i32, i32
  }
}

</mosaic_0001>

<bundles_post_ra>
// kernel: tpu_custom_call.1
= control target key start
LH: loop header
LB: loop body
LE: loop exit
PB: predicated region body
PF: predicated region fallthrough
CT: control target
= control target key end

     0   :  { %s5549_s0 = inlined_call_operand.hbm [shape: bf16[8,6400], index: 0, kind: input, shape index: {}]   ;;  %s5550_s1 = inlined_call_operand.hbm [shape: bf16[6400,256], index: 1, kind: input, shape index: {}]   ;;  %s5551_s2 = inlined_call_operand.hbm [shape: f32[1,256], index: 2, kind: input, shape index: {}]   ;;  %s5552_s3 = inlined_call_operand.hbm [shape: f32[1,256], index: 3, kind: input, shape index: {}]   ;;  %s5553_s4 = inlined_call_operand.<no memory space> [shape: f32[1,1], index: 4, kind: input, shape index: {}]   ;;  %s5554_s5 = inlined_call_operand.vmem [shape: f32[8,1], index: 5, kind: output, shape index: {}]  }
   0x1   :  { %v10_v0 = vstv %s5553_s4 }
   0x2   :  { %11 = vst [vmem:[#allocation3] sm:$0x1] %v10_v0 }
   0x3   :  { %12 = vsyncpa [#allocation5], 0 }
   0x4   :  { %14 = vsyncpa [#allocation5 + $0x1], 0 }
   0x5   :  { %15 = vsyncpa [#allocation7], 0 }
   0x6   :  { %17 = vsyncpa [#allocation7 + $0x1], 0 }
   0x7   :  { %18 = vsyncpa [#allocation10], 0  ;;  %s4832_s20 = smov 0   ;;  %s4834_s21 = smov 0  }
   0x8   :  { %s4836_s22 = smov 0   ;;  %s4838_s23 = smov 0  }
   0x9 LB: > { %s4851_s4 = sadd.s32 4294967295, %s4789_s23   ;;  %p44_p0 = scmp.ne.s32.totalorder %s4781_s21, %s4777_s20  ;;  %s4789_s23 = sphi %s4838_s23, %s5572_s23   ;;  %s4785_s22 = sphi %s4836_s22, %s5571_s22   ;;  %s4781_s21 = sphi %s4834_s21, %s5570_s21   ;;  %s4777_s20 = sphi %s4832_s20, %s5569_s20  }
   0xa   : > { %p5555_p1 = scmp.eq.s32.totalorder %s4851_s4, 0  ;;  %p3481_p2 = scmp.ge.s32.totalorder %s4789_s23, 1 }
   0xb   : > { %p165_p3 = scmp.lt.s32.totalorder %s4789_s23, 3  ;;  %s4791_s26 = smov [#allocation8]  }
   0xc   : > { %p4860_p5 = por %p5555_p1, %p44_p0  ;;  %s178_s27 = sshll.u32 %s4791_s26, 4  ;;  %s179_s27 = int_to_ptr.vmem [resolvable:$true] %s178_s27 }
   0xd   : > { %p4864_p6 = pnand %p3481_p2, %p165_p3  ;;  %s4792_s28 = smov [#allocation9]  }
   0xe   : > { %s5558_s24 = scalar_select %p4860_p5, 1, 0 }
   0xf   : > { %s5559_s25 = scalar_select %p4864_p6, 1, 0 }
  0x10   : > { %p3941_p7 = pneg %p4864_p6  ;;  %s189_s29 = sshll.u32 %s4792_s28, 4  ;;  %s4876_s29 = int_to_ptr.vmem [resolvable:$true] %s189_s29 }
  0x11   : > { %s4879_s6 = sadd.s32 1, %s4789_s23   ;;  %s4627_s10 = scalar_lea.hbm %s5551_s2, 32 }
  0x12   : > { %p4872_p8 = pnand %p3941_p7, %p5555_p1  ;;  %s28_s7 = ssub.s32 %s4789_s23, %s4879_s6 }
  0x13   : > { %p4628_p9 = scmp.ne.s32.totalorder %s5551_s2, %s4627_s10  ;;  %p4634_p13 = scmp.lt.u32.totalorder %s4627_s10, %s5551_s2 }
  0x14   : > { %p4629_p10 = pneg %p4872_p8 }
  0x16   : > { %p4630_p11 = pnand %p4629_p10, %p4628_p9 }
  0x18   : > { %p4631_p12 = pneg %p4630_p11 }
  0x1a   : > { %p4636_p0 = pnand %p4634_p13, %p4631_p12 }
  0x1c   : > { %4639 = shalt.err (!%p4636_p0)
}
  0x1d   : > { %s4640_s15 = scalar_lea.vmem %s179_s27, 32  ;;  %p4648_p4 = scmp.lt.s32.totalorder %s179_s27, %s179_s27 }
  0x1e   : > { %p4641_p2 = scmp.ne.s32.totalorder %s179_s27, %s4640_s15  ;;  %p4649_p1 = scmp.lt.s32.totalorder %s4640_s15, %s4640_s15 }
  0x20   : > { %p4643_p3 = pnand %p4641_p2, %p4629_p10  ;;  %p4650_p5 = por %p4649_p1, %p4648_p4 }
  0x22   : > { %p4644_p7 = pneg %p4643_p3 }
  0x24   : > { %p4651_p6 = pnand %p4650_p5, %p4644_p7 }
  0x26   : > { %4654 = shalt.err (!%p4651_p6)
}
  0x27   : > { %3944 = dma.hbm_to_vmem [thread:$0]  (!%p4872_p8), %s5551_s2, 32, %s179_s27, [#allocation7]  }
  0x28   : > { %s4655_s20 = scalar_lea.hbm %s5552_s3, 32 }
  0x29   : > { %p4656_p9 = scmp.ne.s32.totalorder %s5552_s3, %s4655_s20  ;;  %p4662_p5 = scmp.lt.u32.totalorder %s4655_s20, %s5552_s3 }
  0x2b   : > { %p4658_p1 = pnand %p4656_p9, %p4629_p10 }
  0x2d   : > { %p4659_p4 = pneg %p4658_p1 }
  0x2f   : > { %p4664_p6 = pnand %p4662_p5, %p4659_p4 }
  0x31   : > { %4667 = shalt.err (!%p4664_p6)
}
  0x32   : > { %s4668_s27 = scalar_lea.vmem %s4876_s29, 32  ;;  %p4676_p0 = scmp.lt.s32.totalorder %s4876_s29, %s4876_s29 }
  0x33   : > { %p4669_p11 = scmp.ne.s32.totalorder %s4876_s29, %s4668_s27  ;;  %p4677_p2 = scmp.lt.s32.totalorder %s4668_s27, %s4668_s27 }
  0x35   : > { %p4671_p12 = pnand %p4669_p11, %p4629_p10  ;;  %p4678_p3 = por %p4677_p2, %p4676_p0 }
  0x37   : > { %p4672_p13 = pneg %p4671_p12 }
  0x39   : > { %p4679_p7 = pnand %p4678_p3, %p4672_p13 }
  0x3b   : > { %4682 = shalt.err (!%p4679_p7)
}
  0x3c   : > { %3947 = dma.hbm_to_vmem [thread:$0]  (!%p4872_p8), %s5552_s3, 32, %s4876_s29, [#allocation10]  }
  0x3d   : > { %p29_p10 = scmp.eq.s32.totalorder %s28_s7, 0  ;;  %s31_s12 = sadd.s32 1, %s4785_s22 }
  0x3e   : > { %p38_p9 = scmp.ne.s32.totalorder %s4785_s22, %s4781_s21  ;;  %p39_p1 = scmp.eq.s32.totalorder %s4789_s23, 0 }
  0x3f   : > { %s4938_s30 = scalar_select %p29_p10, %s4785_s22, %s31_s12  }
  0x40   : > { %p40_p4 = por %p39_p1, %p38_p9  ;;  %p3957_p5 = scmp.lt.s32.totalorder %s4789_s23, 2 }
  0x41   : > { %s4942_s13 = sand.u32 1, %s4785_s22   ;;  %s3921_s14 = smul.u32 1600, %s4789_s23 }
  0x42   : > { %s3925_s15 = smul.u32 100, %s4942_s13  ;;  %p4951_p8 = pnand %p3957_p5, %p40_p4 }
  0x43   : > { %s4949_s29 = scalar_lea.hbm %s5549_s0, %s3921_s14  ;;  %s3926_s18 = smul.u32 3200, %s4942_s13 }
  0x44   : > { %s207_s19 = scalar_lea.vmem [#allocation4], %s3925_s15  ;;  %s204_s26 = scalar_lea.sflag [#allocation5], %s4942_s13 }
  0x45   : > { %s215_s20 = sshll.u32 %s207_s19, 4  ;;  %s4683_s28 = scalar_lea.hbm %s4949_s29, 1600  ;;  %s4956_s20 = int_to_ptr.vmem [resolvable:$true] %s215_s20 }
  0x46   : > { %p4684_p6 = scmp.ne.s32.totalorder %s4949_s29, %s4683_s28  ;;  %p4685_p11 = pneg %p4951_p8 }
  0x47   : > { %s4688_s27 = scalar_lea.hbm %s5549_s0, 3200  ;;  %p4689_p0 = scmp.lt.u32.totalorder %s4949_s29, %s5549_s0 }
  0x48   : > { %p4686_p12 = pnand %p4685_p11, %p4684_p6  ;;  %p4690_p2 = scmp.lt.u32.totalorder %s4688_s27, %s4683_s28 }
  0x49   : > { %p4692_p7 = scmp.lt.u32.totalorder %s4683_s28, %s4949_s29 }
  0x4a   : > { %p4687_p13 = pneg %p4686_p12  ;;  %p4691_p3 = por %p4690_p2, %p4689_p0 }
  0x4c   : > { %p4693_p10 = por %p4692_p7, %p4691_p3 }
  0x4e   : > { %p4694_p9 = pnand %p4693_p10, %p4687_p13 }
  0x50   : > { %4697 = shalt.err (!%p4694_p9)
}
  0x51   : > { %s4698_s12 = scalar_lea.vmem %s4956_s20, 1600  ;;  %s4793_s14 = smov [#allocation4]  }
  0x52   : > { %p4699_p1 = scmp.ne.s32.totalorder %s4956_s20, %s4698_s12  ;;  %s4703_s15 = sshll.u32 %s4793_s14, 4  ;;  %s4704_s15 = int_to_ptr.vmem [resolvable:$false] %s4703_s15 }
  0x53   : > { %s4705_s16 = scalar_lea.vmem %s4704_s15, 3200  ;;  %p4706_p6 = scmp.lt.s32.totalorder %s4956_s20, %s4704_s15 }
  0x54   : > { %p4701_p4 = pnand %p4699_p1, %p4685_p11  ;;  %p4707_p12 = scmp.lt.s32.totalorder %s4705_s16, %s4698_s12 }
  0x56   : > { %p4702_p5 = pneg %p4701_p4  ;;  %p4708_p0 = por %p4707_p12, %p4706_p6 }
  0x58   : > { %p4709_p2 = pnand %p4708_p0, %p4702_p5 }
  0x5a   : > { %4712 = shalt.err (!%p4709_p2)
}
  0x5b   : > { %3951 = dma.hbm_to_vmem [thread:$0]  (!%p4951_p8), %s4949_s29, 1600, %s4956_s20, %s204_s26  }
  0x5c   : > { %s226_s17 = scalar_lea.vmem [#allocation6], %s3926_s18  ;;  %s222_s28 = sand.u32 1, %s4789_s23  }
  0x5d   : > { %s234_s19 = sshll.u32 %s226_s17, 4  ;;  %s3924_s8 = smul.u32 51200, %s4789_s23  ;;  %s4987_s19 = int_to_ptr.vmem [resolvable:$true] %s234_s19 }
  0x5e   : > { %s4995_s11 = scalar_lea.sflag [#allocation7], %s222_s28  ;;  %s4718_s23 = scalar_lea.hbm %s5550_s1, 102400 }
  0x5f   : > { %s4993_s10 = scalar_lea.hbm %s5550_s1, %s3924_s8 }
  0x60   : > { %s4713_s12 = scalar_lea.hbm %s4993_s10, 51200  ;;  %p4719_p10 = scmp.lt.u32.totalorder %s4993_s10, %s5550_s1 }
  0x61   : > { %p4714_p13 = scmp.ne.s32.totalorder %s4993_s10, %s4713_s12  ;;  %p4720_p9 = scmp.lt.u32.totalorder %s4718_s23, %s4713_s12 }
  0x62   : > { %p4722_p4 = scmp.lt.u32.totalorder %s4713_s12, %s4993_s10 }
  0x63   : > { %p4716_p3 = pnand %p4714_p13, %p4685_p11  ;;  %p4721_p1 = por %p4720_p9, %p4719_p10 }
  0x65   : > { %p4717_p7 = pneg %p4716_p3  ;;  %p4723_p5 = por %p4722_p4, %p4721_p1 }
  0x67   : > { %p4724_p6 = pnand %p4723_p5, %p4717_p7 }
  0x69   : > { %4727 = shalt.err (!%p4724_p6)
}
  0x6a   : > { %s4728_s26 = scalar_lea.vmem %s4987_s19, 51200  ;;  %s4794_s14 = smov [#allocation6]  }
  0x6b   : > { %p4729_p12 = scmp.ne.s32.totalorder %s4987_s19, %s4728_s26  ;;  %s4733_s15 = sshll.u32 %s4794_s14, 4  ;;  %s4734_s15 = int_to_ptr.vmem [resolvable:$false] %s4733_s15 }
  0x6c   : > { %s4735_s16 = scalar_lea.vmem %s4734_s15, 102400  ;;  %p4736_p13 = scmp.lt.s32.totalorder %s4987_s19, %s4734_s15 }
  0x6d   : > { %p4731_p0 = pnand %p4729_p12, %p4685_p11  ;;  %p4737_p3 = scmp.lt.s32.totalorder %s4735_s16, %s4728_s26 }
  0x6f   : > { %p4732_p2 = pneg %p4731_p0  ;;  %p4738_p10 = por %p4737_p3, %p4736_p13 }
  0x71   : > { %p4739_p9 = pnand %p4738_p10, %p4732_p2 }
  0x73   : > { %4742 = shalt.err (!%p4739_p9)
}
  0x74   : > { %s4795_s17 = smov 128   ;;  %s4796_s28 = smov 8  }
  0x75   : > { %3954 = dma.hbm_to_vmem [thread:$0]  (!%p4951_p8), %s4993_s10, 51200, %s4987_s19, %s4995_s11, %s4795_s17, %s4795_s17, %s4796_s28  }
  0x76   : > { %p5562_p11 = scmp.ne.s32.totalorder %s5559_s25, 0 }
  0x77   : > { %s248_s8 = sand.u32 (!%p5562_p11), 1, %s4781_s21   ;;  %p5563_p7 = scmp.ne.s32.totalorder (!%p5562_p11), %s5558_s24, 0 }
  0x78   : > { %246 = sbr.rel (%p5562_p11) target bundleno = 971 (0x3cb), region = 40  ;;  %s249_s27 = scalar_lea.sflag (!%p5562_p11), [#allocation5], %s248_s8 }
  0x79   : > { %s3927_s9 = smul.u32 (!%p5562_p11), 100, %s248_s8 }
  0x7b   : > { %s5024_s12 = scalar_lea.vmem (!%p5562_p11), [#allocation4], %s3927_s9 }
  0x7f   : > { %4760 = dma.done.wait (%p5563_p7), %s249_s27, 1600  }
  0x80   : > { %4762 = vsyncadd (%p5563_p7), %s249_s27, 4294965696  ;;  %s257_s13 = sand.u32 1, %s4851_s4   ;;  %s3928_s7 = smul.u32 3200, %s248_s8 }
  0x81   : > { %s258_s19 = scalar_lea.sflag [#allocation7], %s257_s13 }
  0x82   : > { %s5031_s10 = scalar_lea.vmem [#allocation6], %s3928_s7 }
  0x83   : > { %4764 = dma.done.wait (%p5563_p7), %s258_s19, 51200  }
  0x84   : > { %4766 = vsyncadd (%p5563_p7), %s258_s19, 4294916096  ;;  %p5564_p8 = scmp.eq.s32.totalorder %s4851_s4, 0 }
  0x86   : > { %4768 = dma.done.wait (%p5564_p8), [#allocation7], 32   ;;  %p5565_p1 = pmov %p5564_p8 }
  0x88   : > { %4770 = vsyncadd (%p5565_p1), [#allocation7], 4294967264  ;;  %p5566_p4 = pmov %p5565_p1 }
  0x89   : > { %p5567_p5 = pmov %p5565_p1 }
  0x8a   : > { %4772 = dma.done.wait (%p5566_p4), [#allocation10], 32  }
  0x8b   : > { %4774 = vsyncadd (%p5567_p5), [#allocation10], 4294967264  ;;  %p5568_p6 = scmp.ne.s32.totalorder %s4851_s4, 0 }
  0x8c   : > { %v4797_v1 = vmov (!%p5568_p6), 0.0  }
  0x8d   : > { %302 = sbr.rel (%p5568_p6) target bundleno = 148 (0x94), region = 60  ;;  %303 = vst [vmem:[#allocation2] sm:$0xff] (!%p5568_p6), %v4797_v1  ;;  %304 = vst [vmem:[#allocation2 + $0x8] sm:$0xff] (!%p5568_p6), %v4797_v1 }
  0x94 PF: > { %v3998_v2 = vld [vmem:[%s5031_s10 + $0x4] ss:$8 sps:$4 sm:$0xff]   ;;  %v4002_v4 = vld [vmem:[%s5031_s10] ss:$8 sps:$4 sm:$0xff]   ;;  %v4004_v6 = vld [vmem:[%s5031_s10 + $0x14] ss:$8 sps:$4 sm:$0xff]  }
  0x95   : > { %v4000_v3 = vld [vmem:[%s5031_s10 + $0x104] ss:$8 sps:$4 sm:$0xff]   ;;  %2808 = vmatprep.subr.bf16.mxu0 %v3998_v2  ;;  %v4003_v5 = vld [vmem:[%s5031_s10 + $0x100] ss:$8 sps:$4 sm:$0xff]   ;;  %v4006_v7 = vld [vmem:[%s5031_s10 + $0x114] ss:$8 sps:$4 sm:$0xff]  }
  0x96   : > { %2849 = vmatprep.subr.bf16.mxu1 %v4000_v3  ;;  %2809 = vmatpush1.bf16.msra.mxu0 %v4002_v4  ;;  %v4008_v8 = vld [vmem:[%s5031_s10 + $0x10] ss:$8 sps:$4 sm:$0xff]   ;;  %v4010_v10 = vld [vmem:[%s5031_s10 + $0x24] ss:$8 sps:$4 sm:$0xff]   ;;  %v4014_v12 = vld [vmem:[%s5031_s10 + $0x20] ss:$8 sps:$4 sm:$0xff]  }
  0x97   : > { %2850 = vmatpush1.bf16.msra.mxu1 %v4003_v5  ;;  %2810 = vmatprep.subr.bf16.mxu0 %v4004_v6  ;;  %v4009_v9 = vld [vmem:[%s5031_s10 + $0x110] ss:$8 sps:$4 sm:$0xff]   ;;  %v4012_v11 = vld [vmem:[%s5031_s10 + $0x124] ss:$8 sps:$4 sm:$0xff]   ;;  %v4015_v13 = vld [vmem:[%s5031_s10 + $0x120] ss:$8 sps:$4 sm:$0xff]  }
  0x98   : > { %2851 = vmatprep.subr.bf16.mxu1 %v4006_v7  ;;  %v4016_v14 = vld [vmem:[%s5031_s10 + $0x34] ss:$8 sps:$4 sm:$0xff]   ;;  %v4020_v16 = vld [vmem:[%s5031_s10 + $0x30] ss:$8 sps:$4 sm:$0xff]   ;;  %v4022_v18 = vld [vmem:[%s5031_s10 + $0x44] ss:$8 sps:$4 sm:$0xff]  }
  0x99   : > { %v4018_v15 = vld [vmem:[%s5031_s10 + $0x134] ss:$8 sps:$4 sm:$0xff]   ;;  %v4021_v17 = vld [vmem:[%s5031_s10 + $0x130] ss:$8 sps:$4 sm:$0xff]   ;;  %v4024_v19 = vld [vmem:[%s5031_s10 + $0x144] ss:$8 sps:$4 sm:$0xff]  }
  0x9a   : > { %2811 = vmatpush1.bf16.msra.mxu0 %v4008_v8  ;;  %v4026_v20 = vld [vmem:[%s5031_s10 + $0x40] ss:$8 sps:$4 sm:$0xff]   ;;  %v4028_v22 = vld [vmem:[%s5031_s10 + $0x54] ss:$8 sps:$4 sm:$0xff]   ;;  %v4032_v24 = vld [vmem:[%s5031_s10 + $0x50] ss:$8 sps:$4 sm:$0xff]  }
  0x9b   : > { %2852 = vmatpush1.bf16.msra.mxu1 %v4009_v9  ;;  %2812 = vmatprep.subr.bf16.mxu0 %v4010_v10  ;;  %v4027_v21 = vld [vmem:[%s5031_s10 + $0x140] ss:$8 sps:$4 sm:$0xff]   ;;  %v4030_v23 = vld [vmem:[%s5031_s10 + $0x154] ss:$8 sps:$4 sm:$0xff]   ;;  %v4033_v25 = vld [vmem:[%s5031_s10 + $0x150] ss:$8 sps:$4 sm:$0xff]  }
  0x9c   : > { %2853 = vmatprep.subr.bf16.mxu1 %v4012_v11  ;;  %v4034_v26 = vld [vmem:[%s5031_s10 + $0x64] ss:$8 sps:$4 sm:$0xff]   ;;  %v4038_v28 = vld [vmem:[%s5031_s10 + $0x60] ss:$8 sps:$4 sm:$0xff]   ;;  %v4040_v30 = vld [vmem:[%s5031_s10 + $0x74] ss:$8 sps:$4 sm:$0xff]  }
  0x9d   : > { %v4036_v27 = vld [vmem:[%s5031_s10 + $0x164] ss:$8 sps:$4 sm:$0xff]   ;;  %v4039_v29 = vld [vmem:[%s5031_s10 + $0x160] ss:$8 sps:$4 sm:$0xff]   ;;  %v4042_v31 = vld [vmem:[%s5031_s10 + $0x174] ss:$8 sps:$4 sm:$0xff]  }
  0x9e   : > { %2813 = vmatpush1.bf16.msra.mxu0 %v4014_v12  ;;  %v4044_v32 = vld [vmem:[%s5031_s10 + $0x70] ss:$8 sps:$4 sm:$0xff]   ;;  %v4046_v34 = vld [vmem:[%s5031_s10 + $0x84] ss:$8 sps:$4 sm:$0xff]   ;;  %v4050_v36 = vld [vmem:[%s5031_s10 + $0x80] ss:$8 sps:$4 sm:$0xff]  }
  0x9f   : > { %2854 = vmatpush1.bf16.msra.mxu1 %v4015_v13  ;;  %2814 = vmatprep.subr.bf16.mxu0 %v4016_v14  ;;  %v4045_v33 = vld [vmem:[%s5031_s10 + $0x170] ss:$8 sps:$4 sm:$0xff]   ;;  %v4048_v35 = vld [vmem:[%s5031_s10 + $0x184] ss:$8 sps:$4 sm:$0xff]   ;;  %v4051_v37 = vld [vmem:[%s5031_s10 + $0x180] ss:$8 sps:$4 sm:$0xff]  }
  0xa0   : > { %2855 = vmatprep.subr.bf16.mxu1 %v4018_v15  ;;  %v4052_v38 = vld [vmem:[%s5031_s10 + $0x94] ss:$8 sps:$4 sm:$0xff]   ;;  %v4056_v40 = vld [vmem:[%s5031_s10 + $0x90] ss:$8 sps:$4 sm:$0xff]   ;;  %v4058_v42 = vld [vmem:[%s5031_s10 + $0xa4] ss:$8 sps:$4 sm:$0xff]  }
  0xa1   : > { %v4054_v39 = vld [vmem:[%s5031_s10 + $0x194] ss:$8 sps:$4 sm:$0xff]   ;;  %v4057_v41 = vld [vmem:[%s5031_s10 + $0x190] ss:$8 sps:$4 sm:$0xff]   ;;  %v4060_v43 = vld [vmem:[%s5031_s10 + $0x1a4] ss:$8 sps:$4 sm:$0xff]  }
  0xa2   : > { %2815 = vmatpush1.bf16.msra.mxu0 %v4020_v16  ;;  %v4062_v44 = vld [vmem:[%s5031_s10 + $0xa0] ss:$8 sps:$4 sm:$0xff]   ;;  %v4064_v46 = vld [vmem:[%s5031_s10 + $0xb4] ss:$8 sps:$4 sm:$0xff]   ;;  %v4068_v51 = vld [vmem:[%s5031_s10 + $0xb0] ss:$8 sps:$4 sm:$0xff]  }
  0xa3   : > { %2856 = vmatpush1.bf16.msra.mxu1 %v4021_v17  ;;  %2816 = vmatprep.subr.bf16.mxu0 %v4022_v18  ;;  %v4063_v45 = vld [vmem:[%s5031_s10 + $0x1a0] ss:$8 sps:$4 sm:$0xff]   ;;  %v4066_v47 = vld [vmem:[%s5031_s10 + $0x1b4] ss:$8 sps:$4 sm:$0xff]   ;;  %v4069_v52 = vld [vmem:[%s5031_s10 + $0x1b0] ss:$8 sps:$4 sm:$0xff]  }
  0xa4   : > { %2857 = vmatprep.subr.bf16.mxu1 %v4024_v19  ;;  %v307_v48 = vld [vmem:[%s5024_s12] sm:$0xff]  ;;  %v308_v50 = vld [vmem:[%s5024_s12 + $0x8] sm:$0xff]  ;;  %p3917_p12 = scmp.ne.s32.totalorder %s4851_s4, 1 }
  0xa5   : > { %v3493_v49 = vcombine.high %v307_v48, %v307_v48  ;;  %v3495_v53 = vcombine.high %v308_v50, %v308_v50  ;;  %v4070_v54 = vld [vmem:[%s5031_s10 + $0xc4] ss:$8 sps:$4 sm:$0xff]   ;;  %v4074_v56 = vld [vmem:[%s5031_s10 + $0xc0] ss:$8 sps:$4 sm:$0xff]   ;;  %v4076_v58 = vld [vmem:[%s5031_s10 + $0xd4] ss:$8 sps:$4 sm:$0xff]   ;;  %v3492_v8 = vcombine.low %v307_v48, %v307_v48  ;;  %v3494_v9 = vcombine.low %v308_v50, %v308_v50 }
  0xa6   : > { %2817 = vmatpush1.bf16.msra.mxu0 %v4026_v20  ;;  %v4072_v55 = vld [vmem:[%s5031_s10 + $0x1c4] ss:$8 sps:$4 sm:$0xff]   ;;  %v4075_v57 = vld [vmem:[%s5031_s10 + $0x1c0] ss:$8 sps:$4 sm:$0xff]   ;;  %v4078_v59 = vld [vmem:[%s5031_s10 + $0x1d4] ss:$8 sps:$4 sm:$0xff]  }
  0xa7   : > { %2858 = vmatpush1.bf16.msra.mxu1 %v4027_v21  ;;  %2818 = vmatprep.subr.bf16.mxu0 %v4028_v22  ;;  %v4080_v60 = vld [vmem:[%s5031_s10 + $0xd0] ss:$8 sps:$4 sm:$0xff]   ;;  %v4082_v62 = vld [vmem:[%s5031_s10 + $0xe4] ss:$8 sps:$4 sm:$0xff]   ;;  %v4086_v0 = vld [vmem:[%s5031_s10 + $0xe0] ss:$8 sps:$4 sm:$0xff]  }
  0xa8   : > { %2859 = vmatprep.subr.bf16.mxu1 %v4030_v23  ;;  %2840 = vmatprep.mubr.bf16.mxu0 %v3493_v49  ;;  %v4081_v61 = vld [vmem:[%s5031_s10 + $0x1d0] ss:$8 sps:$4 sm:$0xff]   ;;  %v4084_v63 = vld [vmem:[%s5031_s10 + $0x1e4] ss:$8 sps:$4 sm:$0xff]   ;;  %v4087_v1 = vld [vmem:[%s5031_s10 + $0x1e0] ss:$8 sps:$4 sm:$0xff]  }
  0xa9   : > { %2881 = vmatprep.mubr.bf16.mxu1 %v3495_v53  ;;  %v4088_v2 = vld [vmem:[%s5031_s10 + $0xf4] ss:$8 sps:$4 sm:$0xff]   ;;  %v4092_v4 = vld [vmem:[%s5031_s10 + $0xf0] ss:$8 sps:$4 sm:$0xff]   ;;  %v4100_v6 = vld [vmem:[%s5031_s10 + $0x204] ss:$8 sps:$4 sm:$0xff]  }
  0xaa   : > { %2819 = vmatpush1.bf16.msra.mxu0 %v4032_v24  ;;  %v4090_v3 = vld [vmem:[%s5031_s10 + $0x1f4] ss:$8 sps:$4 sm:$0xff]   ;;  %v4093_v5 = vld [vmem:[%s5031_s10 + $0x1f0] ss:$8 sps:$4 sm:$0xff]   ;;  %v4103_v7 = vld [vmem:[%s5031_s10 + $0x304] ss:$8 sps:$4 sm:$0xff]  }
  0xab   : > { %2860 = vmatpush1.bf16.msra.mxu1 %v4033_v25  ;;  %2820 = vmatprep.subr.bf16.mxu0 %v4034_v26  ;;  %v4098_v10 = vld [vmem:[%s5031_s10 + $0x200] ss:$8 sps:$4 sm:$0xff]   ;;  %v4106_v12 = vld [vmem:[%s5031_s10 + $0x214] ss:$8 sps:$4 sm:$0xff]   ;;  %v4104_v14 = vld [vmem:[%s5031_s10 + $0x210] ss:$8 sps:$4 sm:$0xff]  }
  0xac   : > { %2861 = vmatprep.subr.bf16.mxu1 %v4036_v27  ;;  %v4101_v11 = vld [vmem:[%s5031_s10 + $0x300] ss:$8 sps:$4 sm:$0xff]   ;;  %v4109_v13 = vld [vmem:[%s5031_s10 + $0x314] ss:$8 sps:$4 sm:$0xff]   ;;  %v4107_v15 = vld [vmem:[%s5031_s10 + $0x310] ss:$8 sps:$4 sm:$0xff]  }
  0xad   : > { %v4112_v16 = vld [vmem:[%s5031_s10 + $0x224] ss:$8 sps:$4 sm:$0xff]   ;;  %v4110_v18 = vld [vmem:[%s5031_s10 + $0x220] ss:$8 sps:$4 sm:$0xff]   ;;  %v4118_v20 = vld [vmem:[%s5031_s10 + $0x234] ss:$8 sps:$4 sm:$0xff]  }
  0xae   : > { %2821 = vmatpush1.bf16.msra.mxu0 %v4038_v28  ;;  %v4115_v17 = vld [vmem:[%s5031_s10 + $0x324] ss:$8 sps:$4 sm:$0xff]   ;;  %v4113_v19 = vld [vmem:[%s5031_s10 + $0x320] ss:$8 sps:$4 sm:$0xff]   ;;  %v4121_v21 = vld [vmem:[%s5031_s10 + $0x334] ss:$8 sps:$4 sm:$0xff]  }
  0xaf   : > { %2862 = vmatpush1.bf16.msra.mxu1 %v4039_v29  ;;  %2822 = vmatprep.subr.bf16.mxu0 %v4040_v30  ;;  %v4116_v22 = vld [vmem:[%s5031_s10 + $0x230] ss:$8 sps:$4 sm:$0xff]   ;;  %v4124_v24 = vld [vmem:[%s5031_s10 + $0x244] ss:$8 sps:$4 sm:$0xff]   ;;  %v4122_v26 = vld [vmem:[%s5031_s10 + $0x240] ss:$8 sps:$4 sm:$0xff]  }
  0xb0   : > { %2863 = vmatprep.subr.bf16.mxu1 %v4042_v31  ;;  %v4119_v23 = vld [vmem:[%s5031_s10 + $0x330] ss:$8 sps:$4 sm:$0xff]   ;;  %v4127_v25 = vld [vmem:[%s5031_s10 + $0x344] ss:$8 sps:$4 sm:$0xff]   ;;  %v4125_v27 = vld [vmem:[%s5031_s10 + $0x340] ss:$8 sps:$4 sm:$0xff]  }
  0xb1   : > { %v4130_v28 = vld [vmem:[%s5031_s10 + $0x254] ss:$8 sps:$4 sm:$0xff]   ;;  %v4128_v30 = vld [vmem:[%s5031_s10 + $0x250] ss:$8 sps:$4 sm:$0xff]   ;;  %v4163_v53 = vld [vmem:[%s5031_s10 + $0x3a4] ss:$8 sps:$4 sm:$0xff]  }
  0xb2   : > { %2823 = vmatpush1.bf16.msra.mxu0 %v4044_v32  ;;  %v4133_v29 = vld [vmem:[%s5031_s10 + $0x354] ss:$8 sps:$4 sm:$0xff]   ;;  %v4131_v31 = vld [vmem:[%s5031_s10 + $0x350] ss:$8 sps:$4 sm:$0xff]   ;;  %v4136_v32 = vld [vmem:[%s5031_s10 + $0x264] ss:$8 sps:$4 sm:$0xff]  }
  0xb3   : > { %2864 = vmatpush1.bf16.msra.mxu1 %v4045_v33  ;;  %2824 = vmatprep.subr.bf16.mxu0 %v4046_v34  ;;  %v4139_v33 = vld [vmem:[%s5031_s10 + $0x364] ss:$8 sps:$4 sm:$0xff]   ;;  %v4154_v48 = vld [vmem:[%s5031_s10 + $0x294] ss:$8 sps:$4 sm:$0xff]   ;;  %v4152_v50 = vld [vmem:[%s5031_s10 + $0x290] ss:$8 sps:$4 sm:$0xff]  }
  0xb4   : > { %2865 = vmatprep.subr.bf16.mxu1 %v4048_v35  ;;  %v5140_v34 = vld [vmem:[%s5024_s12 + $0x10] sm:$0xff]  ;;  %v4157_v49 = vld [vmem:[%s5031_s10 + $0x394] ss:$8 sps:$4 sm:$0xff]   ;;  %vm3397_vm0 = vcmask (!%p3917_p12), 7168  }
  0xb5   : > { %v4134_v35 = vld [vmem:[%s5031_s10 + $0x260] ss:$8 sps:$4 sm:$0xff]  }
  0xb6   : > { %2825 = vmatpush1.bf16.msra.mxu0 %v4050_v36  ;;  %v4137_v36 = vld [vmem:[%s5031_s10 + $0x360] ss:$8 sps:$4 sm:$0xff]  }
  0xb7   : > { %2866 = vmatpush1.bf16.msra.mxu1 %v4051_v37  ;;  %2826 = vmatprep.subr.bf16.mxu0 %v4052_v38  ;;  %v3497_v37 = vcombine.high %v5140_v34, %v5140_v34  ;;  %v5147_v38 = vld [vmem:[%s5024_s12 + $0x18] sm:$0xff] }
  0xb8   : > { %2867 = vmatprep.subr.bf16.mxu1 %v4054_v39  ;;  %v4142_v39 = vld [vmem:[%s5031_s10 + $0x274] ss:$8 sps:$4 sm:$0xff]  }
  0xba   : > { %2827 = vmatpush1.bf16.msra.mxu0 %v4056_v40  ;;  %v3499_v40 = vcombine.high %v5147_v38, %v5147_v38 }
  0xbb   : > { %2868 = vmatpush1.bf16.msra.mxu1 %v4057_v41  ;;  %2828 = vmatprep.subr.bf16.mxu0 %v4058_v42  ;;  %v4145_v41 = vld [vmem:[%s5031_s10 + $0x374] ss:$8 sps:$4 sm:$0xff]   ;;  %v4140_v42 = vld [vmem:[%s5031_s10 + $0x270] ss:$8 sps:$4 sm:$0xff]  }
  0xbc   : > { %2869 = vmatprep.subr.bf16.mxu1 %v4060_v43  ;;  %v4143_v43 = vld [vmem:[%s5031_s10 + $0x370] ss:$8 sps:$4 sm:$0xff]  }
  0xbe   : > { %2829 = vmatpush1.bf16.msra.mxu0 %v4062_v44  ;;  %v4148_v44 = vld [vmem:[%s5031_s10 + $0x284] ss:$8 sps:$4 sm:$0xff]  }
  0xbf   : > { %2870 = vmatpush1.bf16.msra.mxu1 %v4063_v45  ;;  %2830 = vmatprep.subr.bf16.mxu0 %v4064_v46  ;;  %v4151_v45 = vld [vmem:[%s5031_s10 + $0x384] ss:$8 sps:$4 sm:$0xff]   ;;  %v4146_v46 = vld [vmem:[%s5031_s10 + $0x280] ss:$8 sps:$4 sm:$0xff]  }
  0xc0   : > { %2871 = vmatprep.subr.bf16.mxu1 %v4066_v47  ;;  %v4149_v47 = vld [vmem:[%s5031_s10 + $0x380] ss:$8 sps:$4 sm:$0xff]  }
  0xc2   : > { %2831 = vmatpush1.bf16.msra.mxu0 %v4068_v51  ;;  %v4155_v51 = vld [vmem:[%s5031_s10 + $0x390] ss:$8 sps:$4 sm:$0xff]  }
  0xc3   : > { %2872 = vmatpush1.bf16.msra.mxu1 %v4069_v52  ;;  %2832 = vmatprep.subr.bf16.mxu0 %v4070_v54  ;;  %v4160_v52 = vld [vmem:[%s5031_s10 + $0x2a4] ss:$8 sps:$4 sm:$0xff]   ;;  %v4158_v54 = vld [vmem:[%s5031_s10 + $0x2a0] ss:$8 sps:$4 sm:$0xff]  }
  0xc4   : > { %2873 = vmatprep.subr.bf16.mxu1 %v4072_v55  ;;  %v4161_v55 = vld [vmem:[%s5031_s10 + $0x3a0] ss:$8 sps:$4 sm:$0xff]  }
  0xc6   : > { %2833 = vmatpush1.bf16.msra.mxu0 %v4074_v56  ;;  %v4166_v56 = vld [vmem:[%s5031_s10 + $0x2b4] ss:$8 sps:$4 sm:$0xff]  }
  0xc7   : > { %2874 = vmatpush1.bf16.msra.mxu1 %v4075_v57  ;;  %2834 = vmatprep.subr.bf16.mxu0 %v4076_v58  ;;  %v4169_v57 = vld [vmem:[%s5031_s10 + $0x3b4] ss:$8 sps:$4 sm:$0xff]   ;;  %v4164_v58 = vld [vmem:[%s5031_s10 + $0x2b0] ss:$8 sps:$4 sm:$0xff]  }
  0xc8   : > { %2875 = vmatprep.subr.bf16.mxu1 %v4078_v59  ;;  %v4167_v59 = vld [vmem:[%s5031_s10 + $0x3b0] ss:$8 sps:$4 sm:$0xff]  }
  0xca   : > { %2835 = vmatpush1.bf16.msra.mxu0 %v4080_v60  ;;  %v4172_v60 = vld [vmem:[%s5031_s10 + $0x2c4] ss:$8 sps:$4 sm:$0xff]  }
  0xcb   : > { %2876 = vmatpush1.bf16.msra.mxu1 %v4081_v61  ;;  %2836 = vmatprep.subr.bf16.mxu0 %v4082_v62  ;;  %v4175_v61 = vld [vmem:[%s5031_s10 + $0x3c4] ss:$8 sps:$4 sm:$0xff]   ;;  %v4170_v62 = vld [vmem:[%s5031_s10 + $0x2c0] ss:$8 sps:$4 sm:$0xff]  }
  0xcc   : > { %2877 = vmatprep.subr.bf16.mxu1 %v4084_v63  ;;  %v4173_v63 = vld [vmem:[%s5031_s10 + $0x3c0] ss:$8 sps:$4 sm:$0xff]  }
  0xce   : > { %2837 = vmatpush1.bf16.msra.mxu0 %v4086_v0  ;;  %v4178_v0 = vld [vmem:[%s5031_s10 + $0x2d4] ss:$8 sps:$4 sm:$0xff]  }
  0xcf   : > { %2878 = vmatpush1.bf16.msra.mxu1 %v4087_v1  ;;  %2838 = vmatprep.subr.bf16.mxu0 %v4088_v2  ;;  %v4181_v1 = vld [vmem:[%s5031_s10 + $0x3d4] ss:$8 sps:$4 sm:$0xff]   ;;  %v4176_v2 = vld [vmem:[%s5031_s10 + $0x2d0] ss:$8 sps:$4 sm:$0xff]  }
  0xd0   : > { %2879 = vmatprep.subr.bf16.mxu1 %v4090_v3  ;;  %v4179_v3 = vld [vmem:[%s5031_s10 + $0x3d0] ss:$8 sps:$4 sm:$0xff]  }
  0xd2   : > { %2839 = vmatpush1.bf16.msra.mxu0 %v4092_v4  ;;  %v4184_v4 = vld [vmem:[%s5031_s10 + $0x2e4] ss:$8 sps:$4 sm:$0xff]  }
  0xd3   : > { %2880 = vmatpush1.bf16.msra.mxu1 %v4093_v5  ;;  %2890 = vmatprep.subr.bf16.mxu0 %v4100_v6  ;;  %v4187_v5 = vld [vmem:[%s5031_s10 + $0x3e4] ss:$8 sps:$4 sm:$0xff]   ;;  %v4182_v6 = vld [vmem:[%s5031_s10 + $0x2e0] ss:$8 sps:$4 sm:$0xff]  }
  0xd4   : > { %2931 = vmatprep.subr.bf16.mxu1 %v4103_v7  ;;  %v4185_v7 = vld [vmem:[%s5031_s10 + $0x3e0] ss:$8 sps:$4 sm:$0xff]  }
  0xd5   : > { %2841 = vmatmul.mubr.bf16.vlgmr.msra.gmra.mrb[0].mxu0 %v3492_v8  ;;  %v4190_v8 = vld [vmem:[%s5031_s10 + $0x2f4] ss:$8 sps:$4 sm:$0xff]  }
  0xd6   : > { %2882 = vmatmul.mubr.bf16.vlgmr.msra.gmra.mrb[0].mxu1 %v3494_v9  ;;  %2891 = vmatpush1.bf16.msra.mxu0 %v4098_v10  ;;  %v4193_v9 = vld [vmem:[%s5031_s10 + $0x3f4] ss:$8 sps:$4 sm:$0xff]   ;;  %v4188_v10 = vld [vmem:[%s5031_s10 + $0x2f0] ss:$8 sps:$4 sm:$0xff]  }
  0xd7   : > { %2932 = vmatpush1.bf16.msra.mxu1 %v4101_v11  ;;  %2892 = vmatprep.subr.bf16.mxu0 %v4106_v12  ;;  %v4191_v11 = vld [vmem:[%s5031_s10 + $0x3f0] ss:$8 sps:$4 sm:$0xff]   ;;  %v4198_v12 = vld [vmem:[%s5031_s10 + $0x404] ss:$8 sps:$4 sm:$0xff]  }
  0xd8   : > { %2933 = vmatprep.subr.bf16.mxu1 %v4109_v13  ;;  %2922 = vmatprep.mubr.bf16.mxu0 %v3497_v37  ;;  %v4203_v13 = vld [vmem:[%s5031_s10 + $0x504] ss:$8 sps:$4 sm:$0xff]   ;;  %v4225_v37 = vld [vmem:[%s5031_s10 + $0x540] ss:$8 sps:$4 sm:$0xff]  }
  0xd9   : > { %2963 = vmatprep.mubr.bf16.mxu1 %v3499_v40  ;;  %v4228_v40 = vld [vmem:[%s5031_s10 + $0x450] ss:$8 sps:$4 sm:$0xff]  }
  0xda   : > { %2893 = vmatpush1.bf16.msra.mxu0 %v4104_v14  ;;  %v3496_v14 = vcombine.low %v5140_v34, %v5140_v34  ;;  %v4224_v34 = vld [vmem:[%s5031_s10 + $0x444] ss:$8 sps:$4 sm:$0xff]  }
  0xdb   : > { %2934 = vmatpush1.bf16.msra.mxu1 %v4107_v15  ;;  %2894 = vmatprep.subr.bf16.mxu0 %v4112_v16  ;;  %v4196_v15 = vld [vmem:[%s5031_s10 + $0x400] ss:$8 sps:$4 sm:$0xff]   ;;  %v3498_v16 = vcombine.low %v5147_v38, %v5147_v38  ;;  %v4230_v38 = vld [vmem:[%s5031_s10 + $0x454] ss:$8 sps:$4 sm:$0xff]  }
  0xdc   : > { %2935 = vmatprep.subr.bf16.mxu1 %v4115_v17  ;;  %v4201_v17 = vld [vmem:[%s5031_s10 + $0x500] ss:$8 sps:$4 sm:$0xff]  }
  0xde   : > { %2895 = vmatpush1.bf16.msra.mxu0 %v4110_v18  ;;  %v4206_v18 = vld [vmem:[%s5031_s10 + $0x414] ss:$8 sps:$4 sm:$0xff]  }
  0xdf   : > { %2936 = vmatpush1.bf16.msra.mxu1 %v4113_v19  ;;  %2896 = vmatprep.subr.bf16.mxu0 %v4118_v20  ;;  %v4209_v19 = vld [vmem:[%s5031_s10 + $0x514] ss:$8 sps:$4 sm:$0xff]  }
  0xe0   : > { %2937 = vmatprep.subr.bf16.mxu1 %v4121_v21  ;;  %v5198_v20 = vld [vmem:[%s5024_s12 + $0x20] sm:$0xff] }
  0xe1   : > { %v3501_v21 = vcombine.high %v5198_v20, %v5198_v20 }
  0xe2   : > { %2897 = vmatpush1.bf16.msra.mxu0 %v4116_v22  ;;  %v5203_v22 = vld [vmem:[%s5024_s12 + $0x28] sm:$0xff] }
  0xe3   : > { %2938 = vmatpush1.bf16.msra.mxu1 %v4119_v23  ;;  %2898 = vmatprep.subr.bf16.mxu0 %v4124_v24  ;;  %v4204_v23 = vld [vmem:[%s5031_s10 + $0x410] ss:$8 sps:$4 sm:$0xff]  }
  0xe4   : > { %2939 = vmatprep.subr.bf16.mxu1 %v4127_v25  ;;  %v4207_v24 = vld [vmem:[%s5031_s10 + $0x510] ss:$8 sps:$4 sm:$0xff]   ;;  %v3503_v25 = vcombine.high %v5203_v22, %v5203_v22 }
  0xe6   : > { %2899 = vmatpush1.bf16.msra.mxu0 %v4122_v26  ;;  %v4212_v26 = vld [vmem:[%s5031_s10 + $0x424] ss:$8 sps:$4 sm:$0xff]  }
  0xe7   : > { %2940 = vmatpush1.bf16.msra.mxu1 %v4125_v27  ;;  %2900 = vmatprep.subr.bf16.mxu0 %v4130_v28  ;;  %v4215_v27 = vld [vmem:[%s5031_s10 + $0x524] ss:$8 sps:$4 sm:$0xff]   ;;  %v4210_v28 = vld [vmem:[%s5031_s10 + $0x420] ss:$8 sps:$4 sm:$0xff]  }
  0xe8   : > { %2941 = vmatprep.subr.bf16.mxu1 %v4133_v29  ;;  %v4213_v29 = vld [vmem:[%s5031_s10 + $0x520] ss:$8 sps:$4 sm:$0xff]  }
  0xea   : > { %2901 = vmatpush1.bf16.msra.mxu0 %v4128_v30  ;;  %v4218_v30 = vld [vmem:[%s5031_s10 + $0x434] ss:$8 sps:$4 sm:$0xff]  }
  0xeb   : > { %2942 = vmatpush1.bf16.msra.mxu1 %v4131_v31  ;;  %2902 = vmatprep.subr.bf16.mxu0 %v4136_v32  ;;  %v4221_v31 = vld [vmem:[%s5031_s10 + $0x534] ss:$8 sps:$4 sm:$0xff]   ;;  %v4216_v32 = vld [vmem:[%s5031_s10 + $0x430] ss:$8 sps:$4 sm:$0xff]  }
  0xec   : > { %2943 = vmatprep.subr.bf16.mxu1 %v4139_v33  ;;  %v4219_v33 = vld [vmem:[%s5031_s10 + $0x530] ss:$8 sps:$4 sm:$0xff]  }
  0xee   : > { %2903 = vmatpush1.bf16.msra.mxu0 %v4134_v35  ;;  %v4227_v35 = vld [vmem:[%s5031_s10 + $0x544] ss:$8 sps:$4 sm:$0xff]  }
  0xef   : > { %2944 = vmatpush1.bf16.msra.mxu1 %v4137_v36  ;;  %2904 = vmatprep.subr.bf16.mxu0 %v4142_v39  ;;  %v4222_v36 = vld [vmem:[%s5031_s10 + $0x440] ss:$8 sps:$4 sm:$0xff]   ;;  %v4233_v39 = vld [vmem:[%s5031_s10 + $0x554] ss:$8 sps:$4 sm:$0xff]  }
  0xf0   : > { %2945 = vmatprep.subr.bf16.mxu1 %v4145_v41  ;;  %v4231_v41 = vld [vmem:[%s5031_s10 + $0x550] ss:$8 sps:$4 sm:$0xff]  }
  0xf2   : > { %2905 = vmatpush1.bf16.msra.mxu0 %v4140_v42  ;;  %v4236_v42 = vld [vmem:[%s5031_s10 + $0x464] ss:$8 sps:$4 sm:$0xff]  }
  0xf3   : > { %2946 = vmatpush1.bf16.msra.mxu1 %v4143_v43  ;;  %2906 = vmatprep.subr.bf16.mxu0 %v4148_v44  ;;  %v4239_v43 = vld [vmem:[%s5031_s10 + $0x564] ss:$8 sps:$4 sm:$0xff]   ;;  %v4234_v44 = vld [vmem:[%s5031_s10 + $0x460] ss:$8 sps:$4 sm:$0xff]  }
  0xf4   : > { %2947 = vmatprep.subr.bf16.mxu1 %v4151_v45  ;;  %v4237_v45 = vld [vmem:[%s5031_s10 + $0x560] ss:$8 sps:$4 sm:$0xff]  }
  0xf6   : > { %2907 = vmatpush1.bf16.msra.mxu0 %v4146_v46  ;;  %v4242_v46 = vld [vmem:[%s5031_s10 + $0x474] ss:$8 sps:$4 sm:$0xff]  }
  0xf7   : > { %2948 = vmatpush1.bf16.msra.mxu1 %v4149_v47  ;;  %2908 = vmatprep.subr.bf16.mxu0 %v4154_v48  ;;  %v4245_v47 = vld [vmem:[%s5031_s10 + $0x574] ss:$8 sps:$4 sm:$0xff]   ;;  %v4240_v48 = vld [vmem:[%s5031_s10 + $0x470] ss:$8 sps:$4 sm:$0xff]  }
  0xf8   : > { %2949 = vmatprep.subr.bf16.mxu1 %v4157_v49  ;;  %v4243_v49 = vld [vmem:[%s5031_s10 + $0x570] ss:$8 sps:$4 sm:$0xff]  }
  0xfa   : > { %2909 = vmatpush1.bf16.msra.mxu0 %v4152_v50  ;;  %v4248_v50 = vld [vmem:[%s5031_s10 + $0x484] ss:$8 sps:$4 sm:$0xff]  }
  0xfb   : > { %2950 = vmatpush1.bf16.msra.mxu1 %v4155_v51  ;;  %2910 = vmatprep.subr.bf16.mxu0 %v4160_v52  ;;  %v4251_v51 = vld [vmem:[%s5031_s10 + $0x584] ss:$8 sps:$4 sm:$0xff]   ;;  %v4246_v52 = vld [vmem:[%s5031_s10 + $0x480] ss:$8 sps:$4 sm:$0xff]  }
  0xfc   : > { %2951 = vmatprep.subr.bf16.mxu1 %v4163_v53  ;;  %v4249_v53 = vld [vmem:[%s5031_s10 + $0x580] ss:$8 sps:$4 sm:$0xff]  }
  0xfe   : > { %2911 = vmatpush1.bf16.msra.mxu0 %v4158_v54  ;;  %v4254_v54 = vld [vmem:[%s5031_s10 + $0x494] ss:$8 sps:$4 sm:$0xff]  }
  0xff   : > { %2952 = vmatpush1.bf16.msra.mxu1 %v4161_v55  ;;  %2912 = vmatprep.subr.bf16.mxu0 %v4166_v56  ;;  %v4257_v55 = vld [vmem:[%s5031_s10 + $0x594] ss:$8 sps:$4 sm:$0xff]   ;;  %v4252_v56 = vld [vmem:[%s5031_s10 + $0x490] ss:$8 sps:$4 sm:$0xff]  }
 0x100   : > { %2953 = vmatprep.subr.bf16.mxu1 %v4169_v57  ;;  %v4255_v57 = vld [vmem:[%s5031_s10 + $0x590] ss:$8 sps:$4 sm:$0xff]  }
 0x102   : > { %2913 = vmatpush1.bf16.msra.mxu0 %v4164_v58  ;;  %v4260_v58 = vld [vmem:[%s5031_s10 + $0x4a4] ss:$8 sps:$4 sm:$0xff]  }
 0x103   : > { %2954 = vmatpush1.bf16.msra.mxu1 %v4167_v59  ;;  %2914 = vmatprep.subr.bf16.mxu0 %v4172_v60  ;;  %v4263_v59 = vld [vmem:[%s5031_s10 + $0x5a4] ss:$8 sps:$4 sm:$0xff]   ;;  %v4258_v60 = vld [vmem:[%s5031_s10 + $0x4a0] ss:$8 sps:$4 sm:$0xff]  }
 0x104   : > { %2955 = vmatprep.subr.bf16.mxu1 %v4175_v61  ;;  %v4261_v61 = vld [vmem:[%s5031_s10 + $0x5a0] ss:$8 sps:$4 sm:$0xff]  }
 0x106   : > { %2915 = vmatpush1.bf16.msra.mxu0 %v4170_v62  ;;  %v4266_v62 = vld [vmem:[%s5031_s10 + $0x4b4] ss:$8 sps:$4 sm:$0xff]  }
 0x107   : > { %2956 = vmatpush1.bf16.msra.mxu1 %v4173_v63  ;;  %2916 = vmatprep.subr.bf16.mxu0 %v4178_v0  ;;  %v4269_v63 = vld [vmem:[%s5031_s10 + $0x5b4] ss:$8 sps:$4 sm:$0xff]   ;;  %v4264_v0 = vld [vmem:[%s5031_s10 + $0x4b0] ss:$8 sps:$4 sm:$0xff]  }
 0x108   : > { %2957 = vmatprep.subr.bf16.mxu1 %v4181_v1  ;;  %v4267_v1 = vld [vmem:[%s5031_s10 + $0x5b0] ss:$8 sps:$4 sm:$0xff]  }
 0x10a   : > { %2917 = vmatpush1.bf16.msra.mxu0 %v4176_v2  ;;  %v4272_v2 = vld [vmem:[%s5031_s10 + $0x4c4] ss:$8 sps:$4 sm:$0xff]  }
 0x10b   : > { %2958 = vmatpush1.bf16.msra.mxu1 %v4179_v3  ;;  %2918 = vmatprep.subr.bf16.mxu0 %v4184_v4  ;;  %v4275_v3 = vld [vmem:[%s5031_s10 + $0x5c4] ss:$8 sps:$4 sm:$0xff]   ;;  %v4270_v4 = vld [vmem:[%s5031_s10 + $0x4c0] ss:$8 sps:$4 sm:$0xff]  }
 0x10c   : > { %2959 = vmatprep.subr.bf16.mxu1 %v4187_v5  ;;  %v4273_v5 = vld [vmem:[%s5031_s10 + $0x5c0] ss:$8 sps:$4 sm:$0xff]  }
 0x10e   : > { %2919 = vmatpush1.bf16.msra.mxu0 %v4182_v6  ;;  %v4278_v6 = vld [vmem:[%s5031_s10 + $0x4d4] ss:$8 sps:$4 sm:$0xff]  }
 0x10f   : > { %2960 = vmatpush1.bf16.msra.mxu1 %v4185_v7  ;;  %2920 = vmatprep.subr.bf16.mxu0 %v4190_v8  ;;  %v4281_v7 = vld [vmem:[%s5031_s10 + $0x5d4] ss:$8 sps:$4 sm:$0xff]   ;;  %v4276_v8 = vld [vmem:[%s5031_s10 + $0x4d0] ss:$8 sps:$4 sm:$0xff]  }
 0x110   : > { %2961 = vmatprep.subr.bf16.mxu1 %v4193_v9  ;;  %v4279_v9 = vld [vmem:[%s5031_s10 + $0x5d0] ss:$8 sps:$4 sm:$0xff]  }
 0x112   : > { %2921 = vmatpush1.bf16.msra.mxu0 %v4188_v10  ;;  %v4284_v10 = vld [vmem:[%s5031_s10 + $0x4e4] ss:$8 sps:$4 sm:$0xff]  }
 0x113   : > { %2962 = vmatpush1.bf16.msra.mxu1 %v4191_v11  ;;  %2972 = vmatprep.subr.bf16.mxu0 %v4198_v12  ;;  %v4287_v11 = vld [vmem:[%s5031_s10 + $0x5e4] ss:$8 sps:$4 sm:$0xff]   ;;  %v4282_v12 = vld [vmem:[%s5031_s10 + $0x4e0] ss:$8 sps:$4 sm:$0xff]  }
 0x114   : > { %3013 = vmatprep.subr.bf16.mxu1 %v4203_v13  ;;  %v4285_v13 = vld [vmem:[%s5031_s10 + $0x5e0] ss:$8 sps:$4 sm:$0xff]  }
 0x115   : > { %2923 = vmatmul.mubr.bf16.vlgmr.msra.gmra.mrb[4].mxu0 %v3496_v14  ;;  %v4290_v14 = vld [vmem:[%s5031_s10 + $0x4f4] ss:$8 sps:$4 sm:$0xff]  }
 0x116   : > { %2964 = vmatmul.mubr.bf16.vlgmr.msra.gmra.mrb[4].mxu1 %v3498_v16  ;;  %2973 = vmatpush1.bf16.msra.mxu0 %v4196_v15  ;;  %v4293_v15 = vld [vmem:[%s5031_s10 + $0x5f4] ss:$8 sps:$4 sm:$0xff]   ;;  %v4288_v16 = vld [vmem:[%s5031_s10 + $0x4f0] ss:$8 sps:$4 sm:$0xff]  }
 0x117   : > { %3014 = vmatpush1.bf16.msra.mxu1 %v4201_v17  ;;  %2974 = vmatprep.subr.bf16.mxu0 %v4206_v18  ;;  %v4291_v17 = vld [vmem:[%s5031_s10 + $0x5f0] ss:$8 sps:$4 sm:$0xff]   ;;  %v4298_v18 = vld [vmem:[%s5031_s10 + $0x604] ss:$8 sps:$4 sm:$0xff]  }
 0x118   : > { %3015 = vmatprep.subr.bf16.mxu1 %v4209_v19  ;;  %3004 = vmatprep.mubr.bf16.mxu0 %v3501_v21  ;;  %v4303_v19 = vld [vmem:[%s5031_s10 + $0x704] ss:$8 sps:$4 sm:$0xff]   ;;  %v4296_v21 = vld [vmem:[%s5031_s10 + $0x600] ss:$8 sps:$4 sm:$0xff]  }
 0x119   : > { %3045 = vmatprep.mubr.bf16.mxu1 %v3503_v25  ;;  %v3502_v25 = vcombine.low %v5203_v22, %v5203_v22 }
 0x11a   : > { %2975 = vmatpush1.bf16.msra.mxu0 %v4204_v23  ;;  %v4301_v23 = vld [vmem:[%s5031_s10 + $0x700] ss:$8 sps:$4 sm:$0xff]  }
 0x11b   : > { %3016 = vmatpush1.bf16.msra.mxu1 %v4207_v24  ;;  %2976 = vmatprep.subr.bf16.mxu0 %v4212_v26  ;;  %v3500_v24 = vcombine.low %v5198_v20, %v5198_v20  ;;  %v5274_v26 = vld [vmem:[%s5024_s12 + $0x30] sm:$0xff] }
 0x11c   : > { %3017 = vmatprep.subr.bf16.mxu1 %v4215_v27  ;;  %v5277_v27 = vld [vmem:[%s5024_s12 + $0x38] sm:$0xff]  ;;  %v3505_v20 = vcombine.high %v5274_v26, %v5274_v26 }
 0x11d   : > { %v3507_v22 = vcombine.high %v5277_v27, %v5277_v27 }
 0x11e   : > { %2977 = vmatpush1.bf16.msra.mxu0 %v4210_v28  ;;  %v4306_v28 = vld [vmem:[%s5031_s10 + $0x614] ss:$8 sps:$4 sm:$0xff]  }
 0x11f   : > { %3018 = vmatpush1.bf16.msra.mxu1 %v4213_v29  ;;  %2978 = vmatprep.subr.bf16.mxu0 %v4218_v30  ;;  %v4309_v29 = vld [vmem:[%s5031_s10 + $0x714] ss:$8 sps:$4 sm:$0xff]   ;;  %v4304_v30 = vld [vmem:[%s5031_s10 + $0x610] ss:$8 sps:$4 sm:$0xff]  }
 0x120   : > { %3019 = vmatprep.subr.bf16.mxu1 %v4221_v31  ;;  %v4307_v31 = vld [vmem:[%s5031_s10 + $0x710] ss:$8 sps:$4 sm:$0xff]  }
 0x122   : > { %2979 = vmatpush1.bf16.msra.mxu0 %v4216_v32  ;;  %v4312_v32 = vld [vmem:[%s5031_s10 + $0x624] ss:$8 sps:$4 sm:$0xff]  }
 0x123   : > { %3020 = vmatpush1.bf16.msra.mxu1 %v4219_v33  ;;  %2980 = vmatprep.subr.bf16.mxu0 %v4224_v34  ;;  %v4315_v33 = vld [vmem:[%s5031_s10 + $0x724] ss:$8 sps:$4 sm:$0xff]   ;;  %v4310_v34 = vld [vmem:[%s5031_s10 + $0x620] ss:$8 sps:$4 sm:$0xff]  }
 0x124   : > { %3021 = vmatprep.subr.bf16.mxu1 %v4227_v35  ;;  %v4313_v35 = vld [vmem:[%s5031_s10 + $0x720] ss:$8 sps:$4 sm:$0xff]  }
 0x126   : > { %2981 = vmatpush1.bf16.msra.mxu0 %v4222_v36  ;;  %v4318_v36 = vld [vmem:[%s5031_s10 + $0x634] ss:$8 sps:$4 sm:$0xff]  }
 0x127   : > { %3022 = vmatpush1.bf16.msra.mxu1 %v4225_v37  ;;  %2982 = vmatprep.subr.bf16.mxu0 %v4230_v38  ;;  %v4321_v37 = vld [vmem:[%s5031_s10 + $0x734] ss:$8 sps:$4 sm:$0xff]   ;;  %v4316_v38 = vld [vmem:[%s5031_s10 + $0x630] ss:$8 sps:$4 sm:$0xff]  }
 0x128   : > { %3023 = vmatprep.subr.bf16.mxu1 %v4233_v39  ;;  %v4319_v39 = vld [vmem:[%s5031_s10 + $0x730] ss:$8 sps:$4 sm:$0xff]  }
 0x12a   : > { %2983 = vmatpush1.bf16.msra.mxu0 %v4228_v40  ;;  %v4324_v40 = vld [vmem:[%s5031_s10 + $0x644] ss:$8 sps:$4 sm:$0xff]  }
 0x12b   : > { %3024 = vmatpush1.bf16.msra.mxu1 %v4231_v41  ;;  %2984 = vmatprep.subr.bf16.mxu0 %v4236_v42  ;;  %v4327_v41 = vld [vmem:[%s5031_s10 + $0x744] ss:$8 sps:$4 sm:$0xff]   ;;  %v4322_v42 = vld [vmem:[%s5031_s10 + $0x640] ss:$8 sps:$4 sm:$0xff]  }
 0x12c   : > { %3025 = vmatprep.subr.bf16.mxu1 %v4239_v43  ;;  %v4325_v43 = vld [vmem:[%s5031_s10 + $0x740] ss:$8 sps:$4 sm:$0xff]  }
 0x12e   : > { %2985 = vmatpush1.bf16.msra.mxu0 %v4234_v44  ;;  %v4330_v44 = vld [vmem:[%s5031_s10 + $0x654] ss:$8 sps:$4 sm:$0xff]  }
 0x12f   : > { %3026 = vmatpush1.bf16.msra.mxu1 %v4237_v45  ;;  %2986 = vmatprep.subr.bf16.mxu0 %v4242_v46  ;;  %v4333_v45 = vld [vmem:[%s5031_s10 + $0x754] ss:$8 sps:$4 sm:$0xff]   ;;  %v4328_v46 = vld [vmem:[%s5031_s10 + $0x650] ss:$8 sps:$4 sm:$0xff]  }
 0x130   : > { %3027 = vmatprep.subr.bf16.mxu1 %v4245_v47  ;;  %v4331_v47 = vld [vmem:[%s5031_s10 + $0x750] ss:$8 sps:$4 sm:$0xff]  }
 0x132   : > { %2987 = vmatpush1.bf16.msra.mxu0 %v4240_v48  ;;  %v4336_v48 = vld [vmem:[%s5031_s10 + $0x664] ss:$8 sps:$4 sm:$0xff]  }
 0x133   : > { %3028 = vmatpush1.bf16.msra.mxu1 %v4243_v49  ;;  %2988 = vmatprep.subr.bf16.mxu0 %v4248_v50  ;;  %v4339_v49 = vld [vmem:[%s5031_s10 + $0x764] ss:$8 sps:$4 sm:$0xff]   ;;  %v4334_v50 = vld [vmem:[%s5031_s10 + $0x660] ss:$8 sps:$4 sm:$0xff]  }
 0x134   : > { %3029 = vmatprep.subr.bf16.mxu1 %v4251_v51  ;;  %v4337_v51 = vld [vmem:[%s5031_s10 + $0x760] ss:$8 sps:$4 sm:$0xff]  }
 0x136   : > { %2989 = vmatpush1.bf16.msra.mxu0 %v4246_v52  ;;  %v4342_v52 = vld [vmem:[%s5031_s10 + $0x674] ss:$8 sps:$4 sm:$0xff]  }
 0x137   : > { %3030 = vmatpush1.bf16.msra.mxu1 %v4249_v53  ;;  %2990 = vmatprep.subr.bf16.mxu0 %v4254_v54  ;;  %v4345_v53 = vld [vmem:[%s5031_s10 + $0x774] ss:$8 sps:$4 sm:$0xff]   ;;  %v4340_v54 = vld [vmem:[%s5031_s10 + $0x670] ss:$8 sps:$4 sm:$0xff]  }
 0x138   : > { %3031 = vmatprep.subr.bf16.mxu1 %v4257_v55  ;;  %v4343_v55 = vld [vmem:[%s5031_s10 + $0x770] ss:$8 sps:$4 sm:$0xff]  }
 0x13a   : > { %2991 = vmatpush1.bf16.msra.mxu0 %v4252_v56  ;;  %v4348_v56 = vld [vmem:[%s5031_s10 + $0x684] ss:$8 sps:$4 sm:$0xff]  }
 0x13b   : > { %3032 = vmatpush1.bf16.msra.mxu1 %v4255_v57  ;;  %2992 = vmatprep.subr.bf16.mxu0 %v4260_v58  ;;  %v4351_v57 = vld [vmem:[%s5031_s10 + $0x784] ss:$8 sps:$4 sm:$0xff]   ;;  %v4346_v58 = vld [vmem:[%s5031_s10 + $0x680] ss:$8 sps:$4 sm:$0xff]  }
 0x13c   : > { %3033 = vmatprep.subr.bf16.mxu1 %v4263_v59  ;;  %v4349_v59 = vld [vmem:[%s5031_s10 + $0x780] ss:$8 sps:$4 sm:$0xff]  }
 0x13e   : > { %2993 = vmatpush1.bf16.msra.mxu0 %v4258_v60  ;;  %v4354_v60 = vld [vmem:[%s5031_s10 + $0x694] ss:$8 sps:$4 sm:$0xff]  }
 0x13f   : > { %3034 = vmatpush1.bf16.msra.mxu1 %v4261_v61  ;;  %2994 = vmatprep.subr.bf16.mxu0 %v4266_v62  ;;  %v4357_v61 = vld [vmem:[%s5031_s10 + $0x794] ss:$8 sps:$4 sm:$0xff]   ;;  %v4352_v62 = vld [vmem:[%s5031_s10 + $0x690] ss:$8 sps:$4 sm:$0xff]  }
 0x140   : > { %3035 = vmatprep.subr.bf16.mxu1 %v4269_v63  ;;  %v4355_v63 = vld [vmem:[%s5031_s10 + $0x790] ss:$8 sps:$4 sm:$0xff]  }
 0x142   : > { %2995 = vmatpush1.bf16.msra.mxu0 %v4264_v0  ;;  %v4360_v0 = vld [vmem:[%s5031_s10 + $0x6a4] ss:$8 sps:$4 sm:$0xff]  }
 0x143   : > { %3036 = vmatpush1.bf16.msra.mxu1 %v4267_v1  ;;  %2996 = vmatprep.subr.bf16.mxu0 %v4272_v2  ;;  %v4363_v1 = vld [vmem:[%s5031_s10 + $0x7a4] ss:$8 sps:$4 sm:$0xff]   ;;  %v4358_v2 = vld [vmem:[%s5031_s10 + $0x6a0] ss:$8 sps:$4 sm:$0xff]  }
 0x144   : > { %3037 = vmatprep.subr.bf16.mxu1 %v4275_v3  ;;  %v4361_v3 = vld [vmem:[%s5031_s10 + $0x7a0] ss:$8 sps:$4 sm:$0xff]  }
 0x146   : > { %2997 = vmatpush1.bf16.msra.mxu0 %v4270_v4  ;;  %v4366_v4 = vld [vmem:[%s5031_s10 + $0x6b4] ss:$8 sps:$4 sm:$0xff]  }
 0x147   : > { %3038 = vmatpush1.bf16.msra.mxu1 %v4273_v5  ;;  %2998 = vmatprep.subr.bf16.mxu0 %v4278_v6  ;;  %v4369_v5 = vld [vmem:[%s5031_s10 + $0x7b4] ss:$8 sps:$4 sm:$0xff]   ;;  %v4364_v6 = vld [vmem:[%s5031_s10 + $0x6b0] ss:$8 sps:$4 sm:$0xff]  }
 0x148   : > { %3039 = vmatprep.subr.bf16.mxu1 %v4281_v7  ;;  %v4367_v7 = vld [vmem:[%s5031_s10 + $0x7b0] ss:$8 sps:$4 sm:$0xff]  }
 0x14a   : > { %2999 = vmatpush1.bf16.msra.mxu0 %v4276_v8  ;;  %v4372_v8 = vld [vmem:[%s5031_s10 + $0x6c4] ss:$8 sps:$4 sm:$0xff]  }
 0x14b   : > { %3040 = vmatpush1.bf16.msra.mxu1 %v4279_v9  ;;  %3000 = vmatprep.subr.bf16.mxu0 %v4284_v10  ;;  %v4375_v9 = vld [vmem:[%s5031_s10 + $0x7c4] ss:$8 sps:$4 sm:$0xff]   ;;  %v4370_v10 = vld [vmem:[%s5031_s10 + $0x6c0] ss:$8 sps:$4 sm:$0xff]  }
 0x14c   : > { %3041 = vmatprep.subr.bf16.mxu1 %v4287_v11  ;;  %v4373_v11 = vld [vmem:[%s5031_s10 + $0x7c0] ss:$8 sps:$4 sm:$0xff]  }
 0x14e   : > { %3001 = vmatpush1.bf16.msra.mxu0 %v4282_v12  ;;  %v4378_v12 = vld [vmem:[%s5031_s10 + $0x6d4] ss:$8 sps:$4 sm:$0xff]  }
 0x14f   : > { %3042 = vmatpush1.bf16.msra.mxu1 %v4285_v13  ;;  %3002 = vmatprep.subr.bf16.mxu0 %v4290_v14  ;;  %v4381_v13 = vld [vmem:[%s5031_s10 + $0x7d4] ss:$8 sps:$4 sm:$0xff]   ;;  %v4376_v14 = vld [vmem:[%s5031_s10 + $0x6d0] ss:$8 sps:$4 sm:$0xff]  }
 0x150   : > { %3043 = vmatprep.subr.bf16.mxu1 %v4293_v15  ;;  %v4379_v15 = vld [vmem:[%s5031_s10 + $0x7d0] ss:$8 sps:$4 sm:$0xff]  }
 0x152   : > { %3003 = vmatpush1.bf16.msra.mxu0 %v4288_v16  ;;  %v4384_v16 = vld [vmem:[%s5031_s10 + $0x6e4] ss:$8 sps:$4 sm:$0xff]  }
 0x153   : > { %3044 = vmatpush1.bf16.msra.mxu1 %v4291_v17  ;;  %3054 = vmatprep.subr.bf16.mxu0 %v4298_v18  ;;  %v4387_v17 = vld [vmem:[%s5031_s10 + $0x7e4] ss:$8 sps:$4 sm:$0xff]   ;;  %v4382_v18 = vld [vmem:[%s5031_s10 + $0x6e0] ss:$8 sps:$4 sm:$0xff]  }
 0x154   : > { %3095 = vmatprep.subr.bf16.mxu1 %v4303_v19  ;;  %v4385_v19 = vld [vmem:[%s5031_s10 + $0x7e0] ss:$8 sps:$4 sm:$0xff]  }
 0x155   : > { %3005 = vmatmul.mubr.bf16.vlgmr.msra.gmra.mrb[8].mxu0 %v3500_v24  ;;  %v4388_v24 = vld [vmem:[%s5031_s10 + $0x6f0] ss:$8 sps:$4 sm:$0xff]  }
 0x156   : > { %3046 = vmatmul.mubr.bf16.vlgmr.msra.gmra.mrb[8].mxu1 %v3502_v25  ;;  %3055 = vmatpush1.bf16.msra.mxu0 %v4296_v21  ;;  %v4390_v21 = vld [vmem:[%s5031_s10 + $0x6f4] ss:$8 sps:$4 sm:$0xff]   ;;  %v4391_v25 = vld [vmem:[%s5031_s10 + $0x7f0] ss:$8 sps:$4 sm:$0xff]  }
 0x157   : > { %3096 = vmatpush1.bf16.msra.mxu1 %v4301_v23  ;;  %3056 = vmatprep.subr.bf16.mxu0 %v4306_v28  ;;  %v4393_v23 = vld [vmem:[%s5031_s10 + $0x7f4] ss:$8 sps:$4 sm:$0xff]   ;;  %v4398_v28 = vld [vmem:[%s5031_s10 + $0x804] ss:$8 sps:$4 sm:$0xff]  }
 0x158   : > { %3097 = vmatprep.subr.bf16.mxu1 %v4309_v29  ;;  %3086 = vmatprep.mubr.bf16.mxu0 %v3505_v20  ;;  %v4403_v29 = vld [vmem:[%s5031_s10 + $0x904] ss:$8 sps:$4 sm:$0xff]   ;;  %v5346_v20 = vld [vmem:[%s5024_s12 + $0x40] sm:$0xff] }
 0x159   : > { %3127 = vmatprep.mubr.bf16.mxu1 %v3507_v22  ;;  %v3504_v22 = vcombine.low %v5274_v26, %v5274_v26  ;;  %v3509_v26 = vcombine.high %v5346_v20, %v5346_v20 }
 0x15a   : > { %3057 = vmatpush1.bf16.msra.mxu0 %v4304_v30  ;;  %v3506_v30 = vcombine.low %v5277_v27, %v5277_v27 }
 0x15b   : > { %3098 = vmatpush1.bf16.msra.mxu1 %v4307_v31  ;;  %3058 = vmatprep.subr.bf16.mxu0 %v4312_v32  ;;  %v5353_v31 = vld [vmem:[%s5024_s12 + $0x48] sm:$0xff] }
 0x15c   : > { %3099 = vmatprep.subr.bf16.mxu1 %v4315_v33  ;;  %v4396_v32 = vld [vmem:[%s5031_s10 + $0x800] ss:$8 sps:$4 sm:$0xff]   ;;  %v3511_v27 = vcombine.high %v5353_v31, %v5353_v31 }
 0x15d   : > { %v4401_v33 = vld [vmem:[%s5031_s10 + $0x900] ss:$8 sps:$4 sm:$0xff]  }
 0x15e   : > { %3059 = vmatpush1.bf16.msra.mxu0 %v4310_v34  ;;  %v4406_v34 = vld [vmem:[%s5031_s10 + $0x814] ss:$8 sps:$4 sm:$0xff]  }
 0x15f   : > { %3100 = vmatpush1.bf16.msra.mxu1 %v4313_v35  ;;  %3060 = vmatprep.subr.bf16.mxu0 %v4318_v36  ;;  %v4409_v35 = vld [vmem:[%s5031_s10 + $0x914] ss:$8 sps:$4 sm:$0xff]   ;;  %v4404_v36 = vld [vmem:[%s5031_s10 + $0x810] ss:$8 sps:$4 sm:$0xff]  }
 0x160   : > { %3101 = vmatprep.subr.bf16.mxu1 %v4321_v37  ;;  %v4407_v37 = vld [vmem:[%s5031_s10 + $0x910] ss:$8 sps:$4 sm:$0xff]  }
 0x162   : > { %3061 = vmatpush1.bf16.msra.mxu0 %v4316_v38  ;;  %v4412_v38 = vld [vmem:[%s5031_s10 + $0x824] ss:$8 sps:$4 sm:$0xff]  }
 0x163   : > { %3102 = vmatpush1.bf16.msra.mxu1 %v4319_v39  ;;  %3062 = vmatprep.subr.bf16.mxu0 %v4324_v40  ;;  %v4415_v39 = vld [vmem:[%s5031_s10 + $0x924] ss:$8 sps:$4 sm:$0xff]   ;;  %v4410_v40 = vld [vmem:[%s5031_s10 + $0x820] ss:$8 sps:$4 sm:$0xff]  }
 0x164   : > { %3103 = vmatprep.subr.bf16.mxu1 %v4327_v41  ;;  %v4413_v41 = vld [vmem:[%s5031_s10 + $0x920] ss:$8 sps:$4 sm:$0xff]  }
 0x166   : > { %3063 = vmatpush1.bf16.msra.mxu0 %v4322_v42  ;;  %v4418_v42 = vld [vmem:[%s5031_s10 + $0x834] ss:$8 sps:$4 sm:$0xff]  }
 0x167   : > { %3104 = vmatpush1.bf16.msra.mxu1 %v4325_v43  ;;  %3064 = vmatprep.subr.bf16.mxu0 %v4330_v44  ;;  %v4421_v43 = vld [vmem:[%s5031_s10 + $0x934] ss:$8 sps:$4 sm:$0xff]   ;;  %v4416_v44 = vld [vmem:[%s5031_s10 + $0x830] ss:$8 sps:$4 sm:$0xff]  }
 0x168   : > { %3105 = vmatprep.subr.bf16.mxu1 %v4333_v45  ;;  %v4419_v45 = vld [vmem:[%s5031_s10 + $0x930] ss:$8 sps:$4 sm:$0xff]  }
 0x16a   : > { %3065 = vmatpush1.bf16.msra.mxu0 %v4328_v46  ;;  %v4424_v46 = vld [vmem:[%s5031_s10 + $0x844] ss:$8 sps:$4 sm:$0xff]  }
 0x16b   : > { %3106 = vmatpush1.bf16.msra.mxu1 %v4331_v47  ;;  %3066 = vmatprep.subr.bf16.mxu0 %v4336_v48  ;;  %v4427_v47 = vld [vmem:[%s5031_s10 + $0x944] ss:$8 sps:$4 sm:$0xff]   ;;  %v4422_v48 = vld [vmem:[%s5031_s10 + $0x840] ss:$8 sps:$4 sm:$0xff]  }
 0x16c   : > { %3107 = vmatprep.subr.bf16.mxu1 %v4339_v49  ;;  %v4425_v49 = vld [vmem:[%s5031_s10 + $0x940] ss:$8 sps:$4 sm:$0xff]  }
 0x16e   : > { %3067 = vmatpush1.bf16.msra.mxu0 %v4334_v50  ;;  %v4430_v50 = vld [vmem:[%s5031_s10 + $0x854] ss:$8 sps:$4 sm:$0xff]  }
 0x16f   : > { %3108 = vmatpush1.bf16.msra.mxu1 %v4337_v51  ;;  %3068 = vmatprep.subr.bf16.mxu0 %v4342_v52  ;;  %v4433_v51 = vld [vmem:[%s5031_s10 + $0x954] ss:$8 sps:$4 sm:$0xff]   ;;  %v4428_v52 = vld [vmem:[%s5031_s10 + $0x850] ss:$8 sps:$4 sm:$0xff]  }
 0x170   : > { %3109 = vmatprep.subr.bf16.mxu1 %v4345_v53  ;;  %v4431_v53 = vld [vmem:[%s5031_s10 + $0x950] ss:$8 sps:$4 sm:$0xff]  }
 0x172   : > { %3069 = vmatpush1.bf16.msra.mxu0 %v4340_v54  ;;  %v4436_v54 = vld [vmem:[%s5031_s10 + $0x864] ss:$8 sps:$4 sm:$0xff]  }
 0x173   : > { %3110 = vmatpush1.bf16.msra.mxu1 %v4343_v55  ;;  %3070 = vmatprep.subr.bf16.mxu0 %v4348_v56  ;;  %v4439_v55 = vld [vmem:[%s5031_s10 + $0x964] ss:$8 sps:$4 sm:$0xff]  }
 0x174   : > { %3111 = vmatprep.subr.bf16.mxu1 %v4351_v57 }
 0x176   : > { %3071 = vmatpush1.bf16.msra.mxu0 %v4346_v58 }
 0x177   : > { %3112 = vmatpush1.bf16.msra.mxu1 %v4349_v59  ;;  %3072 = vmatprep.subr.bf16.mxu0 %v4354_v60 }
 0x178   : > { %3113 = vmatprep.subr.bf16.mxu1 %v4357_v61 }
 0x17a   : > { %3073 = vmatpush1.bf16.msra.mxu0 %v4352_v62 }
 0x17b   : > { %3114 = vmatpush1.bf16.msra.mxu1 %v4355_v63  ;;  %3074 = vmatprep.subr.bf16.mxu0 %v4360_v0  ;;  %v4434_v63 = vld [vmem:[%s5031_s10 + $0x860] ss:$8 sps:$4 sm:$0xff]  }
 0x17c   : > { %3115 = vmatprep.subr.bf16.mxu1 %v4363_v1  ;;  %v4437_v0 = vld [vmem:[%s5031_s10 + $0x960] ss:$8 sps:$4 sm:$0xff]  }
 0x17e   : > { %3075 = vmatpush1.bf16.msra.mxu0 %v4358_v2 }
 0x17f   : > { %3116 = vmatpush1.bf16.msra.mxu1 %v4361_v3  ;;  %3076 = vmatprep.subr.bf16.mxu0 %v4366_v4  ;;  %v4442_v3 = vld [vmem:[%s5031_s10 + $0x874] ss:$8 sps:$4 sm:$0xff]  }
 0x180   : > { %3117 = vmatprep.subr.bf16.mxu1 %v4369_v5  ;;  %v4445_v4 = vld [vmem:[%s5031_s10 + $0x974] ss:$8 sps:$4 sm:$0xff]  }
 0x182   : > { %3077 = vmatpush1.bf16.msra.mxu0 %v4364_v6  ;;  %v4440_v6 = vld [vmem:[%s5031_s10 + $0x870] ss:$8 sps:$4 sm:$0xff]  }
 0x183   : > { %3118 = vmatpush1.bf16.msra.mxu1 %v4367_v7  ;;  %3078 = vmatprep.subr.bf16.mxu0 %v4372_v8  ;;  %v4443_v7 = vld [vmem:[%s5031_s10 + $0x970] ss:$8 sps:$4 sm:$0xff]   ;;  %v4448_v8 = vld [vmem:[%s5031_s10 + $0x884] ss:$8 sps:$4 sm:$0xff]  }
 0x184   : > { %3119 = vmatprep.subr.bf16.mxu1 %v4375_v9  ;;  %v4451_v9 = vld [vmem:[%s5031_s10 + $0x984] ss:$8 sps:$4 sm:$0xff]  }
 0x186   : > { %3079 = vmatpush1.bf16.msra.mxu0 %v4370_v10  ;;  %v4446_v10 = vld [vmem:[%s5031_s10 + $0x880] ss:$8 sps:$4 sm:$0xff]  }
 0x187   : > { %3120 = vmatpush1.bf16.msra.mxu1 %v4373_v11  ;;  %3080 = vmatprep.subr.bf16.mxu0 %v4378_v12  ;;  %v4449_v11 = vld [vmem:[%s5031_s10 + $0x980] ss:$8 sps:$4 sm:$0xff]   ;;  %v4454_v12 = vld [vmem:[%s5031_s10 + $0x894] ss:$8 sps:$4 sm:$0xff]  }
 0x188   : > { %3121 = vmatprep.subr.bf16.mxu1 %v4381_v13  ;;  %v4457_v13 = vld [vmem:[%s5031_s10 + $0x994] ss:$8 sps:$4 sm:$0xff]  }
 0x18a   : > { %3081 = vmatpush1.bf16.msra.mxu0 %v4376_v14  ;;  %v4452_v14 = vld [vmem:[%s5031_s10 + $0x890] ss:$8 sps:$4 sm:$0xff]  }
 0x18b   : > { %3122 = vmatpush1.bf16.msra.mxu1 %v4379_v15  ;;  %3082 = vmatprep.subr.bf16.mxu0 %v4384_v16  ;;  %v4455_v15 = vld [vmem:[%s5031_s10 + $0x990] ss:$8 sps:$4 sm:$0xff]   ;;  %v4460_v16 = vld [vmem:[%s5031_s10 + $0x8a4] ss:$8 sps:$4 sm:$0xff]  }
 0x18c   : > { %3123 = vmatprep.subr.bf16.mxu1 %v4387_v17  ;;  %v4463_v17 = vld [vmem:[%s5031_s10 + $0x9a4] ss:$8 sps:$4 sm:$0xff]  }
 0x18e   : > { %3083 = vmatpush1.bf16.msra.mxu0 %v4382_v18  ;;  %v4458_v18 = vld [vmem:[%s5031_s10 + $0x8a0] ss:$8 sps:$4 sm:$0xff]  }
 0x18f   : > { %3124 = vmatpush1.bf16.msra.mxu1 %v4385_v19  ;;  %3084 = vmatprep.subr.bf16.mxu0 %v4390_v21  ;;  %v4461_v19 = vld [vmem:[%s5031_s10 + $0x9a0] ss:$8 sps:$4 sm:$0xff]   ;;  %v4466_v21 = vld [vmem:[%s5031_s10 + $0x8b4] ss:$8 sps:$4 sm:$0xff]  }
 0x190   : > { %3125 = vmatprep.subr.bf16.mxu1 %v4393_v23  ;;  %v4469_v23 = vld [vmem:[%s5031_s10 + $0x9b4] ss:$8 sps:$4 sm:$0xff]  }
 0x192   : > { %3085 = vmatpush1.bf16.msra.mxu0 %v4388_v24  ;;  %v4464_v24 = vld [vmem:[%s5031_s10 + $0x8b0] ss:$8 sps:$4 sm:$0xff]  }
 0x193   : > { %3126 = vmatpush1.bf16.msra.mxu1 %v4391_v25  ;;  %3136 = vmatprep.subr.bf16.mxu0 %v4398_v28  ;;  %v4467_v25 = vld [vmem:[%s5031_s10 + $0x9b0] ss:$8 sps:$4 sm:$0xff]   ;;  %v4472_v28 = vld [vmem:[%s5031_s10 + $0x8c4] ss:$8 sps:$4 sm:$0xff]  }
 0x194   : > { %3177 = vmatprep.subr.bf16.mxu1 %v4403_v29  ;;  %v4475_v29 = vld [vmem:[%s5031_s10 + $0x9c4] ss:$8 sps:$4 sm:$0xff]  }
 0x195   : > { %3087 = vmatmul.mubr.bf16.vlgmr.msra.gmra.mrb[12].mxu0 %v3504_v22  ;;  %v4470_v22 = vld [vmem:[%s5031_s10 + $0x8c0] ss:$8 sps:$4 sm:$0xff]  }
 0x196   : > { %3128 = vmatmul.mubr.bf16.vlgmr.msra.gmra.mrb[12].mxu1 %v3506_v30  ;;  %3137 = vmatpush1.bf16.msra.mxu0 %v4396_v32  ;;  %v4473_v30 = vld [vmem:[%s5031_s10 + $0x9c0] ss:$8 sps:$4 sm:$0xff]   ;;  %v4478_v32 = vld [vmem:[%s5031_s10 + $0x8d4] ss:$8 sps:$4 sm:$0xff]  }
 0x197   : > { %3178 = vmatpush1.bf16.msra.mxu1 %v4401_v33  ;;  %3138 = vmatprep.subr.bf16.mxu0 %v4406_v34  ;;  %v4481_v33 = vld [vmem:[%s5031_s10 + $0x9d4] ss:$8 sps:$4 sm:$0xff]   ;;  %v4476_v34 = vld [vmem:[%s5031_s10 + $0x8d0] ss:$8 sps:$4 sm:$0xff]  }
 0x198   : > { %3179 = vmatprep.subr.bf16.mxu1 %v4409_v35  ;;  %3168 = vmatprep.mubr.bf16.mxu0 %v3509_v26  ;;  %v4479_v35 = vld [vmem:[%s5031_s10 + $0x9d0] ss:$8 sps:$4 sm:$0xff]   ;;  %v4484_v26 = vld [vmem:[%s5031_s10 + $0x8e4] ss:$8 sps:$4 sm:$0xff]  }
 0x199   : > { %3209 = vmatprep.mubr.bf16.mxu1 %v3511_v27  ;;  %v4487_v27 = vld [vmem:[%s5031_s10 + $0x9e4] ss:$8 sps:$4 sm:$0xff]  }
 0x19a   : > { %3139 = vmatpush1.bf16.msra.mxu0 %v4404_v36  ;;  %v4482_v36 = vld [vmem:[%s5031_s10 + $0x8e0] ss:$8 sps:$4 sm:$0xff]  }
 0x19b   : > { %3180 = vmatpush1.bf16.msra.mxu1 %v4407_v37  ;;  %3140 = vmatprep.subr.bf16.mxu0 %v4412_v38  ;;  %v4485_v37 = vld [vmem:[%s5031_s10 + $0x9e0] ss:$8 sps:$4 sm:$0xff]   ;;  %v4490_v38 = vld [vmem:[%s5031_s10 + $0x8f4] ss:$8 sps:$4 sm:$0xff]  }
 0x19c   : > { %3181 = vmatprep.subr.bf16.mxu1 %v4415_v39  ;;  %v4493_v39 = vld [vmem:[%s5031_s10 + $0x9f4] ss:$8 sps:$4 sm:$0xff]  }
 0x19e   : > { %3141 = vmatpush1.bf16.msra.mxu0 %v4410_v40  ;;  %v4488_v40 = vld [vmem:[%s5031_s10 + $0x8f0] ss:$8 sps:$4 sm:$0xff]  }
 0x19f   : > { %3182 = vmatpush1.bf16.msra.mxu1 %v4413_v41  ;;  %3142 = vmatprep.subr.bf16.mxu0 %v4418_v42  ;;  %v4491_v41 = vld [vmem:[%s5031_s10 + $0x9f0] ss:$8 sps:$4 sm:$0xff]   ;;  %v4498_v42 = vld [vmem:[%s5031_s10 + $0xa04] ss:$8 sps:$4 sm:$0xff]  }
 0x1a0   : > { %3183 = vmatprep.subr.bf16.mxu1 %v4421_v43  ;;  %v4503_v43 = vld [vmem:[%s5031_s10 + $0xb04] ss:$8 sps:$4 sm:$0xff]  }
 0x1a2   : > { %3143 = vmatpush1.bf16.msra.mxu0 %v4416_v44  ;;  %v3508_v44 = vcombine.low %v5346_v20, %v5346_v20 }
 0x1a3   : > { %3184 = vmatpush1.bf16.msra.mxu1 %v4419_v45  ;;  %3144 = vmatprep.subr.bf16.mxu0 %v4424_v46  ;;  %v3510_v45 = vcombine.low %v5353_v31, %v5353_v31  ;;  %v5432_v46 = vld [vmem:[%s5024_s12 + $0x50] sm:$0xff] }
 0x1a4   : > { %3185 = vmatprep.subr.bf16.mxu1 %v4427_v47  ;;  %v5435_v47 = vld [vmem:[%s5024_s12 + $0x58] sm:$0xff]  ;;  %v3513_v20 = vcombine.high %v5432_v46, %v5432_v46 }
 0x1a5   : > { %v3515_v31 = vcombine.high %v5435_v47, %v5435_v47 }
 0x1a6   : > { %3145 = vmatpush1.bf16.msra.mxu0 %v4422_v48  ;;  %v4496_v48 = vld [vmem:[%s5031_s10 + $0xa00] ss:$8 sps:$4 sm:$0xff]  }
 0x1a7   : > { %3186 = vmatpush1.bf16.msra.mxu1 %v4425_v49  ;;  %3146 = vmatprep.subr.bf16.mxu0 %v4430_v50  ;;  %v4501_v49 = vld [vmem:[%s5031_s10 + $0xb00] ss:$8 sps:$4 sm:$0xff]   ;;  %v4506_v50 = vld [vmem:[%s5031_s10 + $0xa14] ss:$8 sps:$4 sm:$0xff]  }
 0x1a8   : > { %3187 = vmatprep.subr.bf16.mxu1 %v4433_v51  ;;  %v2842_v56 = vpop.f32.mrb[0].mxu0  ;;  %v4509_v51 = vld [vmem:[%s5031_s10 + $0xb14] ss:$8 sps:$4 sm:$0xff]  }
 0x1a9   : > { %v2883_v57 = vpop.f32.mrb[0].mxu1  ;;  %v2844_v59 = vpop.f32.mrb[1].mxu0 }
 0x1aa   : > { %v5383_v58 = vadd.f32 %v2883_v57, %v2842_v56  ;;  %v2885_v60 = vpop.f32.mrb[1].mxu1  ;;  %v2846_v62 = vpop.f32.mrb[2].mxu0  ;;  %3147 = vmatpush1.bf16.msra.mxu0 %v4428_v52  ;;  %v4504_v52 = vld [vmem:[%s5031_s10 + $0xa10] ss:$8 sps:$4 sm:$0xff]   ;;  %v4510_v56 = vld [vmem:[%s5031_s10 + $0xa20] ss:$8 sps:$4 sm:$0xff]  }
 0x1ab   : > { %v5385_v61 = vadd.f32 %v2885_v60, %v2844_v59  ;;  %3188 = vmatpush1.bf16.msra.mxu1 %v4431_v53  ;;  %v2887_v1 = vpop.f32.mrb[2].mxu1  ;;  %v2847_v2 = vpop.f32.mrb[3].mxu0  ;;  %3148 = vmatprep.subr.bf16.mxu0 %v4436_v54  ;;  %v4507_v53 = vld [vmem:[%s5031_s10 + $0xb10] ss:$8 sps:$4 sm:$0xff]   ;;  %v4512_v54 = vld [vmem:[%s5031_s10 + $0xa24] ss:$8 sps:$4 sm:$0xff]  }
 0x1ac   : > { %3189 = vmatprep.subr.bf16.mxu1 %v4439_v55  ;;  %v2888_v5 = vpop.f32.mrb[3].mxu1  ;;  %v4515_v55 = vld [vmem:[%s5031_s10 + $0xb24] ss:$8 sps:$4 sm:$0xff]   ;;  %v4513_v57 = vld [vmem:[%s5031_s10 + $0xb20] ss:$8 sps:$4 sm:$0xff]  }
 0x1ad   : > { %v4518_v59 = vld [vmem:[%s5031_s10 + $0xa34] ss:$8 sps:$4 sm:$0xff]   ;;  %v4516_v62 = vld [vmem:[%s5031_s10 + $0xa30] ss:$8 sps:$4 sm:$0xff]   ;;  %v4527_v1 = vld [vmem:[%s5031_s10 + $0xb44] ss:$8 sps:$4 sm:$0xff]  }
 0x1ae   : > { %3149 = vmatpush1.bf16.msra.mxu0 %v4434_v63  ;;  %v4521_v60 = vld [vmem:[%s5031_s10 + $0xb34] ss:$8 sps:$4 sm:$0xff]   ;;  %v4519_v63 = vld [vmem:[%s5031_s10 + $0xb30] ss:$8 sps:$4 sm:$0xff]   ;;  %v4522_v2 = vld [vmem:[%s5031_s10 + $0xa40] ss:$8 sps:$4 sm:$0xff]  }
 0x1af   : > { %3190 = vmatpush1.bf16.msra.mxu1 %v4437_v0  ;;  %3150 = vmatprep.subr.bf16.mxu0 %v4442_v3  ;;  %v4524_v0 = vld [vmem:[%s5031_s10 + $0xa44] ss:$8 sps:$4 sm:$0xff]   ;;  %v4525_v3 = vld [vmem:[%s5031_s10 + $0xb40] ss:$8 sps:$4 sm:$0xff]   ;;  %v4533_v5 = vld [vmem:[%s5031_s10 + $0xb54] ss:$8 sps:$4 sm:$0xff]  }
 0x1b0   : > { %3191 = vmatprep.subr.bf16.mxu1 %v4445_v4  ;;  %v4530_v4 = vld [vmem:[%s5031_s10 + $0xa54] ss:$8 sps:$4 sm:$0xff]  }
 0x1b2   : > { %3151 = vmatpush1.bf16.msra.mxu0 %v4440_v6  ;;  %v4528_v6 = vld [vmem:[%s5031_s10 + $0xa50] ss:$8 sps:$4 sm:$0xff]  }
 0x1b3   : > { %3192 = vmatpush1.bf16.msra.mxu1 %v4443_v7  ;;  %3152 = vmatprep.subr.bf16.mxu0 %v4448_v8  ;;  %v4531_v7 = vld [vmem:[%s5031_s10 + $0xb50] ss:$8 sps:$4 sm:$0xff]   ;;  %v4536_v8 = vld [vmem:[%s5031_s10 + $0xa64] ss:$8 sps:$4 sm:$0xff]  }
 0x1b4   : > { %3193 = vmatprep.subr.bf16.mxu1 %v4451_v9  ;;  %v4539_v9 = vld [vmem:[%s5031_s10 + $0xb64] ss:$8 sps:$4 sm:$0xff]  }
 0x1b6   : > { %3153 = vmatpush1.bf16.msra.mxu0 %v4446_v10 }
 0x1b7   : > { %3194 = vmatpush1.bf16.msra.mxu1 %v4449_v11  ;;  %3154 = vmatprep.subr.bf16.mxu0 %v4454_v12 }
 0x1b8   : > { %3195 = vmatprep.subr.bf16.mxu1 %v4457_v13 }
 0x1ba   : > { %3155 = vmatpush1.bf16.msra.mxu0 %v4452_v14 }
 0x1bb   : > { %3196 = vmatpush1.bf16.msra.mxu1 %v4455_v15  ;;  %3156 = vmatprep.subr.bf16.mxu0 %v4460_v16 }
 0x1bc   : > { %3197 = vmatprep.subr.bf16.mxu1 %v4463_v17  ;;  %v4534_v17 = vld [vmem:[%s5031_s10 + $0xa60] ss:$8 sps:$4 sm:$0xff]  }
 0x1be   : > { %3157 = vmatpush1.bf16.msra.mxu0 %v4458_v18  ;;  %v4537_v18 = vld [vmem:[%s5031_s10 + $0xb60] ss:$8 sps:$4 sm:$0xff]  }
 0x1bf   : > { %3198 = vmatpush1.bf16.msra.mxu1 %v4461_v19  ;;  %3158 = vmatprep.subr.bf16.mxu0 %v4466_v21 }
 0x1c0   : > { %3199 = vmatprep.subr.bf16.mxu1 %v4469_v23 }
 0x1c2   : > { %3159 = vmatpush1.bf16.msra.mxu0 %v4464_v24  ;;  %v4545_v24 = vld [vmem:[%s5031_s10 + $0xb74] ss:$8 sps:$4 sm:$0xff]  }
 0x1c3   : > { %3200 = vmatpush1.bf16.msra.mxu1 %v4467_v25  ;;  %3160 = vmatprep.subr.bf16.mxu0 %v4472_v28  ;;  %v4540_v28 = vld [vmem:[%s5031_s10 + $0xa70] ss:$8 sps:$4 sm:$0xff]  }
 0x1c4   : > { %3201 = vmatprep.subr.bf16.mxu1 %v4475_v29  ;;  %v4543_v29 = vld [vmem:[%s5031_s10 + $0xb70] ss:$8 sps:$4 sm:$0xff]  }
 0x1c6   : > { %3161 = vmatpush1.bf16.msra.mxu0 %v4470_v22  ;;  %v4548_v22 = vld [vmem:[%s5031_s10 + $0xa84] ss:$8 sps:$4 sm:$0xff]  }
 0x1c7   : > { %3202 = vmatpush1.bf16.msra.mxu1 %v4473_v30  ;;  %3162 = vmatprep.subr.bf16.mxu0 %v4478_v32  ;;  %v4551_v30 = vld [vmem:[%s5031_s10 + $0xb84] ss:$8 sps:$4 sm:$0xff]   ;;  %v4546_v32 = vld [vmem:[%s5031_s10 + $0xa80] ss:$8 sps:$4 sm:$0xff]  }
 0x1c8   : > { %3203 = vmatprep.subr.bf16.mxu1 %v4481_v33  ;;  %v4549_v33 = vld [vmem:[%s5031_s10 + $0xb80] ss:$8 sps:$4 sm:$0xff]  }
 0x1ca   : > { %3163 = vmatpush1.bf16.msra.mxu0 %v4476_v34  ;;  %v4554_v34 = vld [vmem:[%s5031_s10 + $0xa94] ss:$8 sps:$4 sm:$0xff]  }
 0x1cb   : > { %3204 = vmatpush1.bf16.msra.mxu1 %v4479_v35  ;;  %3164 = vmatprep.subr.bf16.mxu0 %v4484_v26  ;;  %v4557_v35 = vld [vmem:[%s5031_s10 + $0xb94] ss:$8 sps:$4 sm:$0xff]   ;;  %v4552_v26 = vld [vmem:[%s5031_s10 + $0xa90] ss:$8 sps:$4 sm:$0xff]  }
 0x1cc   : > { %3205 = vmatprep.subr.bf16.mxu1 %v4487_v27  ;;  %v4555_v27 = vld [vmem:[%s5031_s10 + $0xb90] ss:$8 sps:$4 sm:$0xff]  }
 0x1ce   : > { %3165 = vmatpush1.bf16.msra.mxu0 %v4482_v36  ;;  %v4560_v36 = vld [vmem:[%s5031_s10 + $0xaa4] ss:$8 sps:$4 sm:$0xff]  }
 0x1cf   : > { %3206 = vmatpush1.bf16.msra.mxu1 %v4485_v37  ;;  %3166 = vmatprep.subr.bf16.mxu0 %v4490_v38  ;;  %v4563_v37 = vld [vmem:[%s5031_s10 + $0xba4] ss:$8 sps:$4 sm:$0xff]   ;;  %v4558_v38 = vld [vmem:[%s5031_s10 + $0xaa0] ss:$8 sps:$4 sm:$0xff]  }
 0x1d0   : > { %3207 = vmatprep.subr.bf16.mxu1 %v4493_v39  ;;  %v4561_v39 = vld [vmem:[%s5031_s10 + $0xba0] ss:$8 sps:$4 sm:$0xff]  }
 0x1d2   : > { %3167 = vmatpush1.bf16.msra.mxu0 %v4488_v40  ;;  %v4566_v40 = vld [vmem:[%s5031_s10 + $0xab4] ss:$8 sps:$4 sm:$0xff]  }
 0x1d3   : > { %3208 = vmatpush1.bf16.msra.mxu1 %v4491_v41  ;;  %3218 = vmatprep.subr.bf16.mxu0 %v4498_v42  ;;  %v4569_v41 = vld [vmem:[%s5031_s10 + $0xbb4] ss:$8 sps:$4 sm:$0xff]   ;;  %v4564_v42 = vld [vmem:[%s5031_s10 + $0xab0] ss:$8 sps:$4 sm:$0xff]  }
 0x1d4   : > { %3259 = vmatprep.subr.bf16.mxu1 %v4503_v43  ;;  %v4567_v43 = vld [vmem:[%s5031_s10 + $0xbb0] ss:$8 sps:$4 sm:$0xff]  }
 0x1d5   : > { %3169 = vmatmul.mubr.bf16.vlgmr.msra.gmra.mrb[16].mxu0 %v3508_v44  ;;  %v4572_v44 = vld [vmem:[%s5031_s10 + $0xac4] ss:$8 sps:$4 sm:$0xff]  }
 0x1d6   : > { %3210 = vmatmul.mubr.bf16.vlgmr.msra.gmra.mrb[16].mxu1 %v3510_v45  ;;  %3219 = vmatpush1.bf16.msra.mxu0 %v4496_v48  ;;  %v4575_v45 = vld [vmem:[%s5031_s10 + $0xbc4] ss:$8 sps:$4 sm:$0xff]   ;;  %v4570_v48 = vld [vmem:[%s5031_s10 + $0xac0] ss:$8 sps:$4 sm:$0xff]  }
 0x1d7   : > { %3260 = vmatpush1.bf16.msra.mxu1 %v4501_v49  ;;  %3220 = vmatprep.subr.bf16.mxu0 %v4506_v50  ;;  %v4573_v49 = vld [vmem:[%s5031_s10 + $0xbc0] ss:$8 sps:$4 sm:$0xff]   ;;  %v4578_v50 = vld [vmem:[%s5031_s10 + $0xad4] ss:$8 sps:$4 sm:$0xff]  }
 0x1d8   : > { %3261 = vmatprep.subr.bf16.mxu1 %v4509_v51  ;;  %3250 = vmatprep.mubr.bf16.mxu0 %v3513_v20  ;;  %v4581_v51 = vld [vmem:[%s5031_s10 + $0xbd4] ss:$8 sps:$4 sm:$0xff]   ;;  %v4576_v20 = vld [vmem:[%s5031_s10 + $0xad0] ss:$8 sps:$4 sm:$0xff]  }
 0x1d9   : > { %3291 = vmatprep.mubr.bf16.mxu1 %v3515_v31  ;;  %v4579_v31 = vld [vmem:[%s5031_s10 + $0xbd0] ss:$8 sps:$4 sm:$0xff]  }
 0x1da   : > { %3221 = vmatpush1.bf16.msra.mxu0 %v4504_v52  ;;  %v4584_v52 = vld [vmem:[%s5031_s10 + $0xae4] ss:$8 sps:$4 sm:$0xff]  }
 0x1db   : > { %3262 = vmatpush1.bf16.msra.mxu1 %v4507_v53  ;;  %3222 = vmatprep.subr.bf16.mxu0 %v4512_v54  ;;  %v4587_v53 = vld [vmem:[%s5031_s10 + $0xbe4] ss:$8 sps:$4 sm:$0xff]   ;;  %v4582_v54 = vld [vmem:[%s5031_s10 + $0xae0] ss:$8 sps:$4 sm:$0xff]  }
 0x1dc   : > { %3263 = vmatprep.subr.bf16.mxu1 %v4515_v55  ;;  %v4585_v55 = vld [vmem:[%s5031_s10 + $0xbe0] ss:$8 sps:$4 sm:$0xff]  }
 0x1de   : > { %3223 = vmatpush1.bf16.msra.mxu0 %v4510_v56  ;;  %v4590_v56 = vld [vmem:[%s5031_s10 + $0xaf4] ss:$8 sps:$4 sm:$0xff]  }
 0x1df   : > { %3264 = vmatpush1.bf16.msra.mxu1 %v4513_v57  ;;  %3224 = vmatprep.subr.bf16.mxu0 %v4518_v59  ;;  %v4593_v57 = vld [vmem:[%s5031_s10 + $0xbf4] ss:$8 sps:$4 sm:$0xff]   ;;  %v4588_v59 = vld [vmem:[%s5031_s10 + $0xaf0] ss:$8 sps:$4 sm:$0xff]  }
 0x1e0   : > { %3265 = vmatprep.subr.bf16.mxu1 %v4521_v60  ;;  %v4591_v60 = vld [vmem:[%s5031_s10 + $0xbf0] ss:$8 sps:$4 sm:$0xff]  }
 0x1e2   : > { %3225 = vmatpush1.bf16.msra.mxu0 %v4516_v62  ;;  %v4598_v62 = vld [vmem:[%s5031_s10 + $0xc04] ss:$8 sps:$4 sm:$0xff]  }
 0x1e3   : > { %3266 = vmatpush1.bf16.msra.mxu1 %v4519_v63  ;;  %3226 = vmatprep.subr.bf16.mxu0 %v4524_v0  ;;  %v3512_v63 = vcombine.low %v5432_v46, %v5432_v46  ;;  %v3514_v0 = vcombine.low %v5435_v47, %v5435_v47  ;;  %v4606_v46 = vld [vmem:[%s5031_s10 + $0xc24] ss:$8 sps:$4 sm:$0xff]   ;;  %v4604_v47 = vld [vmem:[%s5031_s10 + $0xc20] ss:$8 sps:$4 sm:$0xff]  }
 0x1e4   : > { %3267 = vmatprep.subr.bf16.mxu1 %v4527_v1  ;;  %v4596_v1 = vld [vmem:[%s5031_s10 + $0xc00] ss:$8 sps:$4 sm:$0xff]  }
 0x1e6   : > { %3227 = vmatpush1.bf16.msra.mxu0 %v4522_v2  ;;  %v4603_v2 = vld [vmem:[%s5031_s10 + $0xc14] ss:$8 sps:$4 sm:$0xff]  }
 0x1e7   : > { %3268 = vmatpush1.bf16.msra.mxu1 %v4525_v3  ;;  %3228 = vmatprep.subr.bf16.mxu0 %v4530_v4  ;;  %v4601_v3 = vld [vmem:[%s5031_s10 + $0xc10] ss:$8 sps:$4 sm:$0xff]   ;;  %v4798_v4 = vmov 0  }
 0x1e8   : > { %3269 = vmatprep.subr.bf16.mxu1 %v4533_v5  ;;  %v2924_v10 = vpop.f32.mrb[4].mxu0  ;;  %v4609_v5 = vld [vmem:[%s5031_s10 + $0xc34] ss:$8 sps:$4 sm:$0xff]  }
 0x1e9   : > { %v2965_v11 = vpop.f32.mrb[4].mxu1  ;;  %v2925_v12 = vadd.f32 %v2924_v10, %v5383_v58  ;;  %v2926_v13 = vpop.f32.mrb[5].mxu0  ;;  %v4542_v58 = vld [vmem:[%s5031_s10 + $0xa74] ss:$8 sps:$4 sm:$0xff]   ;;  %v4613_v10 = vld [vmem:[%s5031_s10 + $0xc50] ss:$8 sps:$4 sm:$0xff]  }
 0x1ea   : > { %v2967_v14 = vpop.f32.mrb[5].mxu1  ;;  %v2927_v15 = vadd.f32 %v2926_v13, %v5385_v61  ;;  %v2928_v16 = vpop.f32.mrb[6].mxu0  ;;  %3229 = vmatpush1.bf16.msra.mxu0 %v4528_v6  ;;  %v4607_v6 = vld [vmem:[%s5031_s10 + $0xc30] ss:$8 sps:$4 sm:$0xff]  }
 0x1eb   : > { %3270 = vmatpush1.bf16.msra.mxu1 %v4531_v7  ;;  %v2969_v19 = vpop.f32.mrb[6].mxu1  ;;  %v5469_v21 = vadd.f32 %v2965_v11, %v2925_v12  ;;  %v2929_v23 = vpop.f32.mrb[7].mxu0  ;;  %3230 = vmatprep.subr.bf16.mxu0 %v4536_v8  ;;  %v4612_v7 = vld [vmem:[%s5031_s10 + $0xc44] ss:$8 sps:$4 sm:$0xff]   ;;  %v4610_v8 = vld [vmem:[%s5031_s10 + $0xc40] ss:$8 sps:$4 sm:$0xff]  }
 0x1ec   : > { %3271 = vmatprep.subr.bf16.mxu1 %v4539_v9  ;;  %v2970_v61 = vpop.f32.mrb[7].mxu1  ;;  %v5473_v25 = vadd.f32 %v2967_v14, %v2927_v15  ;;  %v4615_v9 = vld [vmem:[%s5031_s10 + $0xc54] ss:$8 sps:$4 sm:$0xff]   ;;  %v4618_v11 = vld [vmem:[%s5031_s10 + $0xc64] ss:$8 sps:$4 sm:$0xff]  }
 0x1ed   : > { %v4616_v19 = vld [vmem:[%s5031_s10 + $0xc60] ss:$8 sps:$4 sm:$0xff]   ;;  %v4621_v61 = vld [vmem:[%s5031_s10 + $0xc74] ss:$8 sps:$4 sm:$0xff]  }
 0x1ee   : > { %3231 = vmatpush1.bf16.msra.mxu0 %v4534_v17 }
 0x1ef   : > { %3272 = vmatpush1.bf16.msra.mxu1 %v4537_v18  ;;  %3232 = vmatprep.subr.bf16.mxu0 %v4542_v58 }
 0x1f0   : > { %3273 = vmatprep.subr.bf16.mxu1 %v4545_v24 }
 0x1f2   : > { %3233 = vmatpush1.bf16.msra.mxu0 %v4540_v28 }
 0x1f3   : > { %3274 = vmatpush1.bf16.msra.mxu1 %v4543_v29  ;;  %3234 = vmatprep.subr.bf16.mxu0 %v4548_v22  ;;  %v4619_v22 = vld [vmem:[%s5031_s10 + $0xc70] ss:$8 sps:$4 sm:$0xff]  }
 0x1f4   : > { %3275 = vmatprep.subr.bf16.mxu1 %v4551_v30  ;;  %v4622_v30 = vld [vmem:[%s5024_s12 + $0x60] ss:$0 sps:$4 sm:$0xff]  }
 0x1f6   : > { %3235 = vmatpush1.bf16.msra.mxu0 %v4546_v32 }
 0x1f7   : > { %3276 = vmatpush1.bf16.msra.mxu1 %v4549_v33  ;;  %3236 = vmatprep.subr.bf16.mxu0 %v4554_v34 }
 0x1f8   : > { %3277 = vmatprep.subr.bf16.mxu1 %v4557_v35 }
 0x1fa   : > { %3237 = vmatpush1.bf16.msra.mxu0 %v4552_v26 }
 0x1fb   : > { %3278 = vmatpush1.bf16.msra.mxu1 %v4555_v27  ;;  %3238 = vmatprep.subr.bf16.mxu0 %v4560_v36 }
 0x1fc   : > { %3279 = vmatprep.subr.bf16.mxu1 %v4563_v37 }
 0x1fe   : > { %3239 = vmatpush1.bf16.msra.mxu0 %v4558_v38 }
 0x1ff   : > { %3280 = vmatpush1.bf16.msra.mxu1 %v4561_v39  ;;  %3240 = vmatprep.subr.bf16.mxu0 %v4566_v40 }
 0x200   : > { %3281 = vmatprep.subr.bf16.mxu1 %v4569_v41 }
 0x202   : > { %3241 = vmatpush1.bf16.msra.mxu0 %v4564_v42 }
 0x203   : > { %3282 = vmatpush1.bf16.msra.mxu1 %v4567_v43  ;;  %3242 = vmatprep.subr.bf16.mxu0 %v4572_v44 }
 0x204   : > { %3283 = vmatprep.subr.bf16.mxu1 %v4575_v45 }
 0x206   : > { %3243 = vmatpush1.bf16.msra.mxu0 %v4570_v48 }
 0x207   : > { %3284 = vmatpush1.bf16.msra.mxu1 %v4573_v49  ;;  %3244 = vmatprep.subr.bf16.mxu0 %v4578_v50 }
 0x208   : > { %3285 = vmatprep.subr.bf16.mxu1 %v4581_v51 }
 0x20a   : > { %3245 = vmatpush1.bf16.msra.mxu0 %v4576_v20 }
 0x20b   : > { %3286 = vmatpush1.bf16.msra.mxu1 %v4579_v31  ;;  %3246 = vmatprep.subr.bf16.mxu0 %v4584_v52 }
 0x20c   : > { %3287 = vmatprep.subr.bf16.mxu1 %v4587_v53 }
 0x20e   : > { %3247 = vmatpush1.bf16.msra.mxu0 %v4582_v54 }
 0x20f   : > { %3288 = vmatpush1.bf16.msra.mxu1 %v4585_v55  ;;  %3248 = vmatprep.subr.bf16.mxu0 %v4590_v56 }
 0x210   : > { %3289 = vmatprep.subr.bf16.mxu1 %v4593_v57 }
 0x212   : > { %3249 = vmatpush1.bf16.msra.mxu0 %v4588_v59 }
 0x213   : > { %3290 = vmatpush1.bf16.msra.mxu1 %v4591_v60  ;;  %3300 = vmatprep.subr.bf16.mxu0 %v4598_v62 }
 0x215   : > { %3251 = vmatmul.mubr.bf16.vlgmr.msra.gmra.mrb[20].mxu0 %v3512_v63 }
 0x216   : > { %3292 = vmatmul.mubr.bf16.vlgmr.msra.gmra.mrb[20].mxu1 %v3514_v0  ;;  %3301 = vmatpush1.bf16.msra.mxu0 %v4596_v1 }
 0x217   : > { %3332 = vmatprep.mubr.bf16.mxu0 %v4798_v4  ;;  %3302 = vmatprep.subr.bf16.mxu0 %v4603_v2  ;;  %v305_v2 = vld [vmem:[#allocation2] sm:$0xff] }
 0x21a   : > { %3303 = vmatpush1.bf16.msra.mxu0 %v4601_v3 }
 0x21b   : > { %3304 = vmatprep.subr.bf16.mxu0 %v4606_v46  ;;  %v306_v46 = vld [vmem:[#allocation2 + $0x8] sm:$0xff] }
 0x21e   : > { %3305 = vmatpush1.bf16.msra.mxu0 %v4604_v47 }
 0x21f   : > { %3306 = vmatprep.subr.bf16.mxu0 %v4609_v5 }
 0x222   : > { %3307 = vmatpush1.bf16.msra.mxu0 %v4607_v6 }
 0x223   : > { %3308 = vmatprep.subr.bf16.mxu0 %v4612_v7 }
 0x226   : > { %3309 = vmatpush1.bf16.msra.mxu0 %v4610_v8 }
 0x227   : > { %3310 = vmatprep.subr.bf16.mxu0 %v4615_v9 }
 0x228   : > { %v3006_v12 = vpop.f32.mrb[8].mxu0 }
 0x229   : > { %v3047_v13 = vpop.f32.mrb[8].mxu1  ;;  %v3007_v14 = vadd.f32 %v3006_v12, %v5469_v21  ;;  %v3008_v15 = vpop.f32.mrb[9].mxu0  ;;  %v3351_v12 = vld [vmem:[#allocation8] sm:$0x3] (!%p3917_p12) }
 0x22a   : > { %v3049_v16 = vpop.f32.mrb[9].mxu1  ;;  %v3009_v17 = vadd.f32 %v3008_v15, %v5473_v25  ;;  %v3010_v18 = vpop.f32.mrb[10].mxu0  ;;  %3311 = vmatpush1.bf16.msra.mxu0 %v4613_v10  ;;  %v3353_v10 = vlaneseq (!%p3917_p12) }
 0x22b   : > { %v3051_v23 = vpop.f32.mrb[10].mxu1  ;;  %v3048_v58 = vadd.f32 %v3047_v13, %v3007_v14  ;;  %v3011_v24 = vpop.f32.mrb[11].mxu0  ;;  %3312 = vmatprep.subr.bf16.mxu0 %v4618_v11 }
 0x22c   : > { %v3052_v28 = vpop.f32.mrb[11].mxu1  ;;  %v3050_v29 = vadd.f32 %v3049_v16, %v3009_v17  ;;  %v3354_v11 = vshrl.u32 (!%p3917_p12), %v3353_v10, 7  ;;  %v3367_v17 = vld [vmem:[#allocation9] sm:$0x3] (!%p3917_p12) }
 0x22e   : > { %3313 = vmatpush1.bf16.msra.mxu0 %v4616_v19  ;;  %v3355_v13 = vsub.s32 (!%p3917_p12), 0, %v3354_v11  ;;  %v3359_v14 = vsub.s32 (!%p3917_p12), 1, %v3354_v11 }
 0x22f   : > { %3314 = vmatprep.subr.bf16.mxu0 %v4621_v61 }
 0x230   : > { %v3356_v18 = vrot.slane (!%p3917_p12), %v3351_v12, %v3355_v13  ;;  %v3360_v19 = vrot.slane (!%p3917_p12), %v3351_v12, %v3359_v14  ;;  %v3372_v24 = vrot.slane (!%p3917_p12), %v3367_v17, %v3355_v13  ;;  %v3376_v61 = vrot.slane (!%p3917_p12), %v3367_v17, %v3359_v14 }
 0x232   : > { %3315 = vmatpush1.bf16.msra.mxu0 %v4619_v22 }
 0x235   : > { %3333 = vmatmul.mubr.bf16.vlgmr.msra.gmra.mrb[24].mxu0 %v4622_v30 }
 0x268   : > { %v3088_v21 = vpop.f32.mrb[12].mxu0 }
 0x269   : > { %v3129_v32 = vpop.f32.mrb[12].mxu1  ;;  %v3089_v33 = vadd.f32 %v3088_v21, %v3048_v58  ;;  %v3090_v25 = vpop.f32.mrb[13].mxu0 }
 0x26a   : > { %v3131_v34 = vpop.f32.mrb[13].mxu1  ;;  %v3091_v35 = vadd.f32 %v3090_v25, %v3050_v29  ;;  %v3092_v26 = vpop.f32.mrb[14].mxu0 }
 0x26b   : > { %v3133_v27 = vpop.f32.mrb[14].mxu1  ;;  %v3130_v36 = vadd.f32 %v3129_v32, %v3089_v33  ;;  %v3093_v37 = vpop.f32.mrb[15].mxu0  ;;  %v3918_v32 = vld [vmem:[#allocation3] ss:$0 sm:$0xff] (!%p3917_p12) }
 0x26c   : > { %v3134_v38 = vpop.f32.mrb[15].mxu1  ;;  %v3132_v39 = vadd.f32 %v3131_v34, %v3091_v35 }
 0x2a8   : > { %v3170_v40 = vpop.f32.mrb[16].mxu0 }
 0x2a9   : > { %v3211_v41 = vpop.f32.mrb[16].mxu1  ;;  %v3171_v42 = vadd.f32 %v3170_v40, %v3130_v36  ;;  %v3172_v43 = vpop.f32.mrb[17].mxu0 }
 0x2aa   : > { %v3213_v44 = vpop.f32.mrb[17].mxu1  ;;  %v3173_v45 = vadd.f32 %v3172_v43, %v3132_v39  ;;  %v3174_v48 = vpop.f32.mrb[18].mxu0 }
 0x2ab   : > { %v3215_v49 = vpop.f32.mrb[18].mxu1  ;;  %v3212_v50 = vadd.f32 %v3211_v41, %v3171_v42  ;;  %v3175_v51 = vpop.f32.mrb[19].mxu0 }
 0x2ac   : > { %v3216_v20 = vpop.f32.mrb[19].mxu1  ;;  %v3214_v31 = vadd.f32 %v3213_v44, %v3173_v45 }
 0x2e8   : > { %v3252_v52 = vpop.f32.mrb[20].mxu0 }
 0x2e9   : > { %v3293_v53 = vpop.f32.mrb[20].mxu1  ;;  %v3253_v54 = vadd.f32 %v3252_v52, %v3212_v50  ;;  %v3254_v55 = vpop.f32.mrb[21].mxu0 }
 0x2ea   : > { %v3295_v56 = vpop.f32.mrb[21].mxu1  ;;  %v3255_v57 = vadd.f32 %v3254_v55, %v3214_v31  ;;  %v3256_v59 = vpop.f32.mrb[22].mxu0 }
 0x2eb   : > { %v3297_v60 = vpop.f32.mrb[22].mxu1  ;;  %v3294_v62 = vadd.f32 %v3293_v53, %v3253_v54  ;;  %v3257_v63 = vpop.f32.mrb[23].mxu0 }
 0x2ec   : > { %v3298_v0 = vpop.f32.mrb[23].mxu1  ;;  %v3296_v1 = vadd.f32 %v3295_v56, %v3255_v57 }
 0x308   : > { %v3334_v3 = vpop.f32.mrb[24].mxu0  ;;  %3348 = sbr.rel (%p3917_p12) target bundleno = 971 (0x3cb), region = 64 }
 0x309   : > { %v3335_v4 = vadd.f32 %v3334_v3, %v3294_v62  ;;  %v3336_v47 = vpop.f32.mrb[25].mxu0 }
 0x30a   : > { %v3337_v5 = vadd.f32 %v3336_v47, %v3296_v1  ;;  %v3338_v6 = vpop.f32.mrb[26].mxu0 }
 0x30b   : > { %v3341_v7 = vadd.f32 %v3335_v4, %v305_v2  ;;  %v3339_v8 = vpop.f32.mrb[27].mxu0 }
 0x30c   : > { %v3342_v9 = vadd.f32 %v3337_v5, %v306_v46 }
 0x30d   : > { %3343 = vst [vmem:[#allocation2] sm:$0xff] %v3341_v7 }
 0x30e   : > { %3344 = vst [vmem:[#allocation2 + $0x8] sm:$0xff] %v3342_v9 }
 0x314   : > { %v3349_v15 = vld [vmem:[#allocation2] sm:$0xff] }
 0x315   : > { %v3350_v16 = vld [vmem:[#allocation2 + $0x8] sm:$0xff]  ;;  %v3363_v23 = vadd.f32 %v3356_v18, %v3349_v15 }
 0x316   : > { %v3364_v58 = vadd.f32 %v3360_v19, %v3350_v16 }
 0x317   : > { %v3365_v28 = vmax.f32 %v3363_v23, 0.0 }
 0x318   : > { %v3366_v29 = vmax.f32 %v3364_v58, 0.0 }
 0x319   : > { %v3379_v22 = vmul.f32 %v3372_v24, %v3365_v28 }
 0x31a   : > { %v3380_v30 = vmul.f32 %v3376_v61, %v3366_v29 }
 0x31c   : > { %v3381_v21 = vadd.f32 %v3380_v30, %v3379_v22 }
 0x31e   : > { %3382 = vadd.xlane.f32.xlu0 %v3381_v21 }
 0x3ab   : > { %v3383_v33 = vpop.xlane.xlu0 %3382 }
 0x3ac   : > { %v3391_v25 = vadd.f32 %v3918_v32, %v3383_v33 }
 0x3ae   : > { %v3392_v34 = vsub.f32 0.0, %v3391_v25 }
 0x3b0   : > { %v3393_v35 = vmul.f32 1.442695, %v3392_v34 }
 0x3b2   : > { %4623 = vpow2.f32 %v3393_v35 }
 0x3bc   : > { %v4624_v26 = vpop.eup %4623 }
 0x3bd   : > { %v3395_v27 = vadd.f32 1.0, %v4624_v26 }
 0x3bf   : > { %4625 = vrcp.f32 %v3395_v27 }
 0x3c9   : > { %v4626_v36 = vpop.eup %4625 }
 0x3ca   : > { %3398 = vst.msk [vmem:[%s5554_s5] sm:$0xff] %vm3397_vm0, %v4626_v36 }
 0x3cb PF: > { %p21_p0 = scmp.ge.s32.totalorder %s4879_s6, 4   ;;  %s5569_s20 = smov %s4781_s21 }
 0x3cc   : > { %s5570_s21 = smov %s4785_s22  ;;  %s5571_s22 = smov %s4938_s30 }
 0x3cd   : > { %s5572_s23 = smov %s4879_s6  ;;  %23 = sbr.rel (!%p21_p0) target bundleno = 9 (0x9), region = 105 }
 0x3d4   :  { %3410 = vsyncpa [#allocation5], 1 }
 0x3d5   :  { %3412 = vsyncpa [#allocation5 + $0x1], 1 }
 0x3d6   :  { %3413 = vsyncpa [#allocation7], 1 }
 0x3d7   :  { %3415 = vsyncpa [#allocation7 + $0x1], 1 }
 0x3d8   :  { %3416 = vsyncpa [#allocation10], 1 }

</bundles_post_ra>
